<compile_context>
chip_gen: v6e
topology: v6e:2x2x1
jax: 0.10.0
libtpu: 0.0.40
codegen_flags: <defaults>
</compile_context>

<pallas_src>
import jax
import jax.numpy as jnp
from jax.experimental import pallas as pl
from jax.experimental.pallas import tpu as pltpu

LANE = 128      # lane width: pad the tiny (3-wide) output to a lane-dense store
SUBLANE = 8


def _round_up(n, m):
    return (n + m - 1) // m * m


def ffn_kernel(x_ref,
               w1_ref, b1_ref,
               w2_ref, b2_ref,
               w3_ref, b3_ref,
               w4_ref, b4_ref,
               o_ref):
    """One batch tile of the 4-layer MLP.

    Layer 1 (K = input_dim, tiny) is done on the VPU via broadcast mul-adds;
    layers 2-4 are bf16 MXU matmuls with f32 accumulation.
    """
    x = x_ref[...].astype(jnp.float32)            # (tile, in_dim) f32
    w1 = w1_ref[...].astype(jnp.float32)          # (in_dim, 1024) f32
    in_dim = x_ref.shape[1]

    # ---- layer 1 on the VPU (K is tiny; a full MXU pass would be wasted) ----
    h = x[:, 0:1] * w1[0:1, :]
    for k in range(1, in_dim):                    # static unroll (in_dim == 2)
        h = h + x[:, k:k + 1] * w1[k:k + 1, :]
    h = h + b1_ref[...].astype(jnp.float32)
    h = jnp.maximum(h, 0.0).astype(jnp.bfloat16)

    # ---- layers 2-4 on the MXU: bf16 operands, f32 accumulation ----
    h = jnp.dot(h, w2_ref[...], preferred_element_type=jnp.float32)
    h = jnp.maximum(h + b2_ref[...].astype(jnp.float32), 0.0).astype(jnp.bfloat16)

    h = jnp.dot(h, w3_ref[...], preferred_element_type=jnp.float32)
    h = jnp.maximum(h + b3_ref[...].astype(jnp.float32), 0.0).astype(jnp.bfloat16)

    o = jnp.dot(h, w4_ref[...], preferred_element_type=jnp.float32)
    o = o + b4_ref[...].astype(jnp.float32)
    o_ref[...] = o.astype(o_ref.dtype)            # lane-dense (tile, 128) store


def ffn_forward(x, params, *, batch_tile=None):
    """x: [B, input_dim] float32. params: list of (W[in,out], b[1,out]) float32."""
    B, in_dim = x.shape
    (w1, b1), (w2, b2), (w3, b3), (w4, b4) = params
    out_dim = w4.shape[1]

    # Batch tiling: fill the MXU M dimension; pad B so any batch size works.
    if batch_tile is None:
        batch_tile = min(_round_up(B, SUBLANE), 512)
    batch_tile = _round_up(batch_tile, SUBLANE)
    B_pad = _round_up(B, batch_tile)
    grid = (B_pad // batch_tile,)

    x_p = jnp.pad(x, ((0, B_pad - B), (0, 0))) if B_pad != B else x

    # dtype / layout prep (once, outside the kernel):
    #   bf16 for the big weights (w2/w3/w4 dominate HBM traffic), f32 for the
    #   tiny w1 and all biases; pad the last layer to 128 output features so the
    #   kernel's store is lane-dense.
    w2b = w2.astype(jnp.bfloat16)
    w3b = w3.astype(jnp.bfloat16)
    w4_pad = jnp.zeros((w4.shape[0], LANE), jnp.bfloat16)
    w4_pad = w4_pad.at[:, :out_dim].set(w4.astype(jnp.bfloat16))
    b4_pad = jnp.zeros((1, LANE), jnp.float32).at[:, :out_dim].set(b4)

    def rep(shape):
        # Grid-invariant (replicated) full-array block.
        return pl.BlockSpec(shape, lambda i: (0,) * len(shape))

    out = pl.pallas_call(
        ffn_kernel,
        out_shape=jax.ShapeDtypeStruct((B_pad, LANE), jnp.float32),
        grid_spec=pltpu.PrefetchScalarGridSpec(
            num_scalar_prefetch=0,
            grid=grid,
            in_specs=[
                pl.BlockSpec((batch_tile, in_dim), lambda i: (i, 0)),
                rep(w1.shape), rep(b1.shape),
                rep(w2b.shape), rep(b2.shape),
                rep(w3b.shape), rep(b3.shape),
                rep(w4_pad.shape), rep(b4_pad.shape),
            ],
            out_specs=pl.BlockSpec((batch_tile, LANE), lambda i: (i, 0)),
        ),
        compiler_params=pltpu.CompilerParams(
            dimension_semantics=("parallel",)),
    )(x_p, w1, b1, w2b, b2, w3b, b3, w4_pad, b4_pad)

    return out[:B, :out_dim]


def init_params(key, dims):
    """Deterministic init mimicking PyTorch nn.Linear default:
    U(-1/sqrt(fan_in), 1/sqrt(fan_in)). dims = [2, 1024, 512, 256, 3]."""
    params = []
    for fan_in, fan_out in zip(dims[:-1], dims[1:]):
        key, kw, kb = jax.random.split(key, 3)
        bound = 1.0 / jnp.sqrt(fan_in)
        W = jax.random.uniform(kw, (fan_in, fan_out), jnp.float32, -bound, bound)
        b = jax.random.uniform(kb, (1, fan_out), jnp.float32, -bound, bound)
        params.append((W, b))
    return params


def ffn_reference(x, params):
    # Full f32 reference (the PyTorch module's semantics).
    h = x
    for i, (W, b) in enumerate(params):
        h = h @ W + b
        if i < len(params) - 1:
            h = jnp.maximum(h, 0.0)
    return h


if __name__ == "__main__":
    key = jax.random.PRNGKey(0)
    key, kx = jax.random.split(key)

    input_dim = 2
    dims = [input_dim, 1024, 512, 256, 3]
    batch = 64

    params = init_params(key, dims)
    x = jax.random.normal(kx, (batch, input_dim), jnp.float32)

    out = jax.block_until_ready(ffn_forward(x, params))
    ref = ffn_reference(x, params)

    assert out.shape == (batch, 3)
    # bf16 weights/activations (f32 accumulation) vs. the pure-f32 reference.
    max_diff = jnp.max(jnp.abs(out - ref))
    assert jnp.allclose(out, ref, atol=2e-2, rtol=2e-2), f"mismatch vs reference (max abs diff {max_diff})"

    print("KERNEL_OK")
</pallas_src>

<mosaic_0001>
module attributes {stable_mosaic.version = 11 : i64} {
  func.func @ffn_kernel(%arg0: i32, %arg1: memref<64x2xf32, #tpu.memory_space<vmem>>, %arg2: memref<2x1024xf32, #tpu.memory_space<vmem>>, %arg3: memref<1x1024xf32, #tpu.memory_space<vmem>>, %arg4: memref<1024x512xbf16, #tpu.memory_space<vmem>>, %arg5: memref<1x512xf32, #tpu.memory_space<vmem>>, %arg6: memref<512x256xbf16, #tpu.memory_space<vmem>>, %arg7: memref<1x256xf32, #tpu.memory_space<vmem>>, %arg8: memref<256x128xbf16, #tpu.memory_space<vmem>>, %arg9: memref<1x128xf32, #tpu.memory_space<vmem>>, %arg10: memref<64x128xf32, #tpu.memory_space<vmem>>) attributes {dimension_semantics = [#tpu.dimension_semantics<parallel>], iteration_bounds = array<i64: 1>, scalar_prefetch = 0 : i64, scratch_operands = 0 : i64, tpu.core_type = #tpu.core_type<tc>, window_params = [{transform_indices = @transform_0, window_bounds = array<i64: 64, 2>}, {pipeline_mode = #tpu.pipeline_mode<synchronous>, transform_indices = @transform_1, window_bounds = array<i64: 2, 1024>}, {pipeline_mode = #tpu.pipeline_mode<synchronous>, transform_indices = @transform_2, window_bounds = array<i64: 1, 1024>}, {pipeline_mode = #tpu.pipeline_mode<synchronous>, transform_indices = @transform_3, window_bounds = array<i64: 1024, 512>}, {pipeline_mode = #tpu.pipeline_mode<synchronous>, transform_indices = @transform_4, window_bounds = array<i64: 1, 512>}, {pipeline_mode = #tpu.pipeline_mode<synchronous>, transform_indices = @transform_5, window_bounds = array<i64: 512, 256>}, {pipeline_mode = #tpu.pipeline_mode<synchronous>, transform_indices = @transform_6, window_bounds = array<i64: 1, 256>}, {pipeline_mode = #tpu.pipeline_mode<synchronous>, transform_indices = @transform_7, window_bounds = array<i64: 256, 128>}, {pipeline_mode = #tpu.pipeline_mode<synchronous>, transform_indices = @transform_8, window_bounds = array<i64: 1, 128>}, {transform_indices = @transform_9, window_bounds = array<i64: 64, 128>}]} {
    %c0 = arith.constant 0 : index
    %c0_0 = arith.constant 0 : index
    %0 = vector.load %arg1[%c0, %c0_0] : memref<64x2xf32, #tpu.memory_space<vmem>>, vector<64x2xf32>
    %c0_1 = arith.constant 0 : index
    %c0_2 = arith.constant 0 : index
    %1 = vector.load %arg2[%c0_1, %c0_2] : memref<2x1024xf32, #tpu.memory_space<vmem>>, vector<2x1024xf32>
    %2 = vector.extract_strided_slice %0 {offsets = [0, 0], sizes = [64, 1], strides = [1, 1]} : vector<64x2xf32> to vector<64x1xf32>
    %3 = vector.extract_strided_slice %1 {offsets = [0, 0], sizes = [1, 1024], strides = [1, 1]} : vector<2x1024xf32> to vector<1x1024xf32>
    %4 = vector.broadcast %2 : vector<64x1xf32> to vector<64x1024xf32>
    %5 = vector.broadcast %3 : vector<1x1024xf32> to vector<64x1024xf32>
    %6 = arith.mulf %4, %5 : vector<64x1024xf32>
    %7 = vector.extract_strided_slice %0 {offsets = [0, 1], sizes = [64, 1], strides = [1, 1]} : vector<64x2xf32> to vector<64x1xf32>
    %8 = vector.extract_strided_slice %1 {offsets = [1, 0], sizes = [1, 1024], strides = [1, 1]} : vector<2x1024xf32> to vector<1x1024xf32>
    %9 = vector.broadcast %7 : vector<64x1xf32> to vector<64x1024xf32>
    %10 = vector.broadcast %8 : vector<1x1024xf32> to vector<64x1024xf32>
    %11 = arith.mulf %9, %10 : vector<64x1024xf32>
    %12 = arith.addf %6, %11 : vector<64x1024xf32>
    %c0_3 = arith.constant 0 : index
    %c0_4 = arith.constant 0 : index
    %13 = vector.load %arg3[%c0_3, %c0_4] : memref<1x1024xf32, #tpu.memory_space<vmem>>, vector<1x1024xf32>
    %14 = vector.broadcast %13 : vector<1x1024xf32> to vector<64x1024xf32>
    %15 = arith.addf %12, %14 : vector<64x1024xf32>
    %cst = arith.constant 0.000000e+00 : f32
    %16 = vector.broadcast %cst : f32 to vector<64x1024xf32>
    %17 = arith.maximumf %15, %16 : vector<64x1024xf32>
    %18 = arith.truncf %17 : vector<64x1024xf32> to vector<64x1024xbf16>
    %c0_5 = arith.constant 0 : index
    %c0_6 = arith.constant 0 : index
    %19 = vector.load %arg4[%c0_5, %c0_6] : memref<1024x512xbf16, #tpu.memory_space<vmem>>, vector<1024x512xbf16>
    %cst_7 = arith.constant dense<0.000000e+00> : vector<64x512xf32>
    %20 = tpu.matmul %18, %19, %cst_7 {dimension_numbers = #tpu.dot_dimension_numbers<[1], [0], [0], [1], [0, 0, 1, 1], [], []>} : vector<64x1024xbf16>, vector<1024x512xbf16>, vector<64x512xf32> -> vector<64x512xf32>
    %c0_8 = arith.constant 0 : index
    %c0_9 = arith.constant 0 : index
    %21 = vector.load %arg5[%c0_8, %c0_9] : memref<1x512xf32, #tpu.memory_space<vmem>>, vector<1x512xf32>
    %22 = vector.broadcast %21 : vector<1x512xf32> to vector<64x512xf32>
    %23 = arith.addf %20, %22 : vector<64x512xf32>
    %cst_10 = arith.constant 0.000000e+00 : f32
    %24 = vector.broadcast %cst_10 : f32 to vector<64x512xf32>
    %25 = arith.maximumf %23, %24 : vector<64x512xf32>
    %26 = arith.truncf %25 : vector<64x512xf32> to vector<64x512xbf16>
    %c0_11 = arith.constant 0 : index
    %c0_12 = arith.constant 0 : index
    %27 = vector.load %arg6[%c0_11, %c0_12] : memref<512x256xbf16, #tpu.memory_space<vmem>>, vector<512x256xbf16>
    %cst_13 = arith.constant dense<0.000000e+00> : vector<64x256xf32>
    %28 = tpu.matmul %26, %27, %cst_13 {dimension_numbers = #tpu.dot_dimension_numbers<[1], [0], [0], [1], [0, 0, 1, 1], [], []>} : vector<64x512xbf16>, vector<512x256xbf16>, vector<64x256xf32> -> vector<64x256xf32>
    %c0_14 = arith.constant 0 : index
    %c0_15 = arith.constant 0 : index
    %29 = vector.load %arg7[%c0_14, %c0_15] : memref<1x256xf32, #tpu.memory_space<vmem>>, vector<1x256xf32>
    %30 = vector.broadcast %29 : vector<1x256xf32> to vector<64x256xf32>
    %31 = arith.addf %28, %30 : vector<64x256xf32>
    %cst_16 = arith.constant 0.000000e+00 : f32
    %32 = vector.broadcast %cst_16 : f32 to vector<64x256xf32>
    %33 = arith.maximumf %31, %32 : vector<64x256xf32>
    %34 = arith.truncf %33 : vector<64x256xf32> to vector<64x256xbf16>
    %c0_17 = arith.constant 0 : index
    %c0_18 = arith.constant 0 : index
    %35 = vector.load %arg8[%c0_17, %c0_18] : memref<256x128xbf16, #tpu.memory_space<vmem>>, vector<256x128xbf16>
    %cst_19 = arith.constant dense<0.000000e+00> : vector<64x128xf32>
    %36 = tpu.matmul %34, %35, %cst_19 {dimension_numbers = #tpu.dot_dimension_numbers<[1], [0], [0], [1], [0, 0, 1, 1], [], []>} : vector<64x256xbf16>, vector<256x128xbf16>, vector<64x128xf32> -> vector<64x128xf32>
    %c0_20 = arith.constant 0 : index
    %c0_21 = arith.constant 0 : index
    %37 = vector.load %arg9[%c0_20, %c0_21] : memref<1x128xf32, #tpu.memory_space<vmem>>, vector<1x128xf32>
    %38 = vector.broadcast %37 : vector<1x128xf32> to vector<64x128xf32>
    %39 = arith.addf %36, %38 : vector<64x128xf32>
    %c0_22 = arith.constant 0 : index
    %c0_23 = arith.constant 0 : index
    %40 = vector.load %arg10[%c0_22, %c0_23] : memref<64x128xf32, #tpu.memory_space<vmem>>, vector<64x128xf32>
    tpu.vector_store %arg10[%c0_22, %c0_23], %39 {strides = array<i32>} : memref<64x128xf32, #tpu.memory_space<vmem>>, vector<64x128xf32>,
    return
  }
  func.func @transform_0(%arg0: i32) -> (i32, i32) {
    %c0_i32 = arith.constant 0 : i32
    %c0_i32_0 = arith.constant 0 : i32
    return %arg0, %c0_i32 : i32, i32
  }
  func.func @transform_1(%arg0: i32) -> (i32, i32) {
    %c0_i32 = arith.constant 0 : i32
    %c0_i32_0 = arith.constant 0 : i32
    %c0_i32_1 = arith.constant 0 : i32
    return %c0_i32, %c0_i32_0 : i32, i32
  }
  func.func @transform_2(%arg0: i32) -> (i32, i32) {
    %c0_i32 = arith.constant 0 : i32
    %c0_i32_0 = arith.constant 0 : i32
    %c0_i32_1 = arith.constant 0 : i32
    return %c0_i32, %c0_i32_0 : i32, i32
  }
  func.func @transform_3(%arg0: i32) -> (i32, i32) {
    %c0_i32 = arith.constant 0 : i32
    %c0_i32_0 = arith.constant 0 : i32
    %c0_i32_1 = arith.constant 0 : i32
    return %c0_i32, %c0_i32_0 : i32, i32
  }
  func.func @transform_4(%arg0: i32) -> (i32, i32) {
    %c0_i32 = arith.constant 0 : i32
    %c0_i32_0 = arith.constant 0 : i32
    %c0_i32_1 = arith.constant 0 : i32
    return %c0_i32, %c0_i32_0 : i32, i32
  }
  func.func @transform_5(%arg0: i32) -> (i32, i32) {
    %c0_i32 = arith.constant 0 : i32
    %c0_i32_0 = arith.constant 0 : i32
    %c0_i32_1 = arith.constant 0 : i32
    return %c0_i32, %c0_i32_0 : i32, i32
  }
  func.func @transform_6(%arg0: i32) -> (i32, i32) {
    %c0_i32 = arith.constant 0 : i32
    %c0_i32_0 = arith.constant 0 : i32
    %c0_i32_1 = arith.constant 0 : i32
    return %c0_i32, %c0_i32_0 : i32, i32
  }
  func.func @transform_7(%arg0: i32) -> (i32, i32) {
    %c0_i32 = arith.constant 0 : i32
    %c0_i32_0 = arith.constant 0 : i32
    %c0_i32_1 = arith.constant 0 : i32
    return %c0_i32, %c0_i32_0 : i32, i32
  }
  func.func @transform_8(%arg0: i32) -> (i32, i32) {
    %c0_i32 = arith.constant 0 : i32
    %c0_i32_0 = arith.constant 0 : i32
    %c0_i32_1 = arith.constant 0 : i32
    return %c0_i32, %c0_i32_0 : i32, i32
  }
  func.func @transform_9(%arg0: i32) -> (i32, i32) {
    %c0_i32 = arith.constant 0 : i32
    %c0_i32_0 = arith.constant 0 : i32
    return %arg0, %c0_i32 : i32, i32
  }
}

</mosaic_0001>

<bundles_post_ra>
// kernel: tpu_custom_call.1
= control target key start
LH: loop header
LB: loop body
LE: loop exit
PB: predicated region body
PF: predicated region fallthrough
CT: control target
= control target key end

     0   :  { %14 = vsyncpa [#allocation3], 0  ;;  %s5712_s0 = inlined_call_operand.vmem [shape: f32[64,2], index: 0, kind: input, shape index: {}]   ;;  %s5713_s1 = inlined_call_operand.vmem [shape: f32[2,1024], index: 1, kind: input, shape index: {}]   ;;  %s5714_s2 = inlined_call_operand.vmem [shape: f32[1,1024], index: 2, kind: input, shape index: {}]   ;;  %s5715_s3 = inlined_call_operand.hbm [shape: bf16[1024,512], index: 3, kind: input, shape index: {}]   ;;  %s5716_s4 = inlined_call_operand.vmem [shape: f32[1,512], index: 4, kind: input, shape index: {}]   ;;  %s5717_s5 = inlined_call_operand.hbm [shape: bf16[512,256], index: 5, kind: input, shape index: {}]   ;;  %s5718_s6 = inlined_call_operand.vmem [shape: f32[1,256], index: 6, kind: input, shape index: {}]   ;;  %s5719_s7 = inlined_call_operand.hbm [shape: bf16[256,128], index: 7, kind: input, shape index: {}]   ;;  %s5720_s8 = inlined_call_operand.vmem [shape: f32[1,128], index: 8, kind: input, shape index: {}]   ;;  %s5721_s9 = inlined_call_operand.hbm [shape: f32[64,128], index: 9, kind: output, shape index: {}]  }
   0x1   :  { %15 = vsyncpa [#allocation6], 0 }
   0x2   :  { %16 = vsyncpa [#allocation4], 0  ;;  %s4677_s30 = smov [#allocation5]  }
   0x3   :  { %s42_s10 = sshll.u32 %s4677_s30, 4  ;;  %s43_s10 = int_to_ptr.vmem [resolvable:$true] %s42_s10 }
   0x4   :  { %s4599_s11 = scalar_lea.vmem %s43_s10, 8192  ;;  %p4604_p1 = scmp.lt.s32.totalorder %s43_s10, %s43_s10 }
   0x5   :  { %p4600_p0 = scmp.ne.s32.totalorder %s43_s10, %s4599_s11  ;;  %p4605_p2 = scmp.lt.s32.totalorder %s4599_s11, %s4599_s11 }
   0x7   :  { %p4606_p3 = por %p4605_p2, %p4604_p1 }
   0x9   :  { %p4607_p4 = pnand %p4606_p3, %p4600_p0 }
   0xb   :  { %4610 = shalt.err (!%p4607_p4)
}
   0xc   :  { %s4678_s12 = smov 128   ;;  %s4679_s13 = smov 8  }
   0xd   :  { %48 = dma.hbm_to_vmem [thread:$0]  %s5717_s5, 8192, %s43_s10, [#allocation6], %s4678_s12, %s4678_s12, %s4679_s13  }
   0xe   :  { %s4680_s16 = smov [#allocation2]  }
   0xf   :  { %s28_s17 = sshll.u32 %s4680_s16, 4  ;;  %s29_s17 = int_to_ptr.vmem [resolvable:$true] %s28_s17 }
  0x10   :  { %s4619_s18 = scalar_lea.vmem %s29_s17, 32768  ;;  %p4624_p6 = scmp.lt.s32.totalorder %s29_s17, %s29_s17 }
  0x11   :  { %p4620_p5 = scmp.ne.s32.totalorder %s29_s17, %s4619_s18  ;;  %p4625_p7 = scmp.lt.s32.totalorder %s4619_s18, %s4619_s18 }
  0x13   :  { %p4626_p8 = por %p4625_p7, %p4624_p6 }
  0x15   :  { %p4627_p9 = pnand %p4626_p8, %p4620_p5 }
  0x17   :  { %4630 = shalt.err (!%p4627_p9)
}
  0x18   :  { %s4681_s19 = smov 256   ;;  %s4682_s20 = smov 16  }
  0x19   :  { %34 = dma.hbm_to_vmem [thread:$0]  %s5715_s3, 32768, %s29_s17, [#allocation3], %s4681_s19, %s4681_s19, %s4682_s20  }
  0x1a   :  { %s4683_s23 = smov [#allocation7]  }
  0x1b   :  { %s56_s24 = sshll.u32 %s4683_s23, 4  ;;  %s57_s24 = int_to_ptr.vmem [resolvable:$true] %s56_s24 }
  0x1c   :  { %s4639_s5 = scalar_lea.vmem %s57_s24, 2048  ;;  %p4644_p11 = scmp.lt.s32.totalorder %s57_s24, %s57_s24 }
  0x1d   :  { %p4640_p10 = scmp.ne.s32.totalorder %s57_s24, %s4639_s5  ;;  %p4645_p12 = scmp.lt.s32.totalorder %s4639_s5, %s4639_s5 }
  0x1f   :  { %p4646_p13 = por %p4645_p12, %p4644_p11 }
  0x21   :  { %p4647_p0 = pnand %p4646_p13, %p4640_p10 }
  0x23   :  { %4650 = shalt.err (!%p4647_p0)
}
  0x24   :  { %s4684_s25 = smov 64   ;;  %s4685_s26 = smov 4  }
  0x25   :  { %62 = dma.hbm_to_vmem [thread:$0]  %s5719_s7, 2048, %s57_s24, [#allocation6], %s4684_s25, %s4684_s25, %s4685_s26  }
  0x26   :  { %4671 = dma.done.wait [#allocation3], 32768  }
  0x27   :  { %4672 = vsyncadd [#allocation3], 4294934528 }
  0x28   :  { %4673 = dma.done.wait [#allocation6], 10240  }
  0x29   :  { %4674 = vsyncadd [#allocation6], 4294957056  ;;  %v4686_v0 = vmov 1   ;;  %v4687_v1 = vmov 0   ;;  %v75_v2 = vld [vmem:[%s5712_s0] sm:$0xff]  ;;  %v76_v3 = vld [vmem:[%s5712_s0 + $0x8] sm:$0xff]  ;;  %v127_v51 = vlaneseq }
  0x2a   :  { %4085 = vset.pattern.permute.xlu1 %v4686_v0  ;;  %4084 = vset.pattern.permute.xlu0 %v4687_v1  ;;  %v4095_v4 = vld [vmem:[#allocation2 + $0xe4] ss:$16 sps:$4 sm:$0xff]   ;;  %v4099_v6 = vld [vmem:[#allocation2 + $0xe0] ss:$16 sps:$4 sm:$0xff]   ;;  %v78_v7 = vld [vmem:[%s5712_s0 + $0x18] sm:$0xff] }
  0x2b   :  { %264 = vperm.xlu1 %4085, %v75_v2   ;;  %87 = vperm.xlu0 %4084, %v75_v2   ;;  %v4097_v5 = vld [vmem:[#allocation2 + $0x2e4] ss:$16 sps:$4 sm:$0xff]   ;;  %v4100_v9 = vld [vmem:[#allocation2 + $0x2e0] ss:$16 sps:$4 sm:$0xff]   ;;  %v80_v21 = vld [vmem:[%s5712_s0 + $0x28] sm:$0xff]  ;;  %v128_v56 = vshrl.u32 %v127_v51, 7 }
  0x2c   :  { %v77_v8 = vld [vmem:[%s5712_s0 + $0x10] sm:$0xff]  ;;  %2255 = vmatprep.subr.bf16.mxu0 %v4095_v4  ;;  %2328 = vmatprep.subr.bf16.mxu1 %v4097_v5  ;;  %v79_v20 = vld [vmem:[%s5712_s0 + $0x20] sm:$0xff]  ;;  %v82_v38 = vld [vmem:[%s5712_s0 + $0x38] sm:$0xff] }
  0x2d   :  { %v4101_v10 = vld [vmem:[#allocation2 + $0xc4] ss:$16 sps:$4 sm:$0xff]   ;;  %2256 = vmatpush1.bf16.msra.mxu0 %v4099_v6  ;;  %2329 = vmatpush1.bf16.msra.mxu1 %v4100_v9  ;;  %v4105_v12 = vld [vmem:[#allocation2 + $0xc0] ss:$16 sps:$4 sm:$0xff]   ;;  %v4791_v62 = vsub.s32 4, %v128_v56 }
  0x2e   :  { %v4103_v11 = vld [vmem:[#allocation2 + $0x2c4] ss:$16 sps:$4 sm:$0xff]   ;;  %v4106_v13 = vld [vmem:[#allocation2 + $0x2c0] ss:$16 sps:$4 sm:$0xff]   ;;  %2257 = vmatprep.subr.bf16.mxu0 %v4101_v10 }
  0x2f   :  { %268 = vperm.xlu1 %4085, %v76_v3   ;;  %92 = vperm.xlu0 %4084, %v76_v3   ;;  %v4107_v14 = vld [vmem:[#allocation2 + $0xa4] ss:$16 sps:$4 sm:$0xff]   ;;  %v4111_v16 = vld [vmem:[#allocation2 + $0xa0] ss:$16 sps:$4 sm:$0xff]  }
  0x30   :  { %v4109_v15 = vld [vmem:[#allocation2 + $0x2a4] ss:$16 sps:$4 sm:$0xff]   ;;  %2330 = vmatprep.subr.bf16.mxu1 %v4103_v11  ;;  %v4112_v17 = vld [vmem:[#allocation2 + $0x2a0] ss:$16 sps:$4 sm:$0xff]  }
  0x31   :  { %2258 = vmatpush1.bf16.msra.mxu0 %v4105_v12  ;;  %2331 = vmatpush1.bf16.msra.mxu1 %v4106_v13  ;;  %v4113_v18 = vld [vmem:[#allocation2 + $0x84] ss:$16 sps:$4 sm:$0xff]   ;;  %v4117_v22 = vld [vmem:[#allocation2 + $0x80] ss:$16 sps:$4 sm:$0xff]  }
  0x32   :  { %2259 = vmatprep.subr.bf16.mxu0 %v4107_v14  ;;  %2332 = vmatprep.subr.bf16.mxu1 %v4109_v15  ;;  %v4115_v19 = vld [vmem:[#allocation2 + $0x284] ss:$16 sps:$4 sm:$0xff]   ;;  %v4118_v23 = vld [vmem:[#allocation2 + $0x280] ss:$16 sps:$4 sm:$0xff]  }
  0x33   :  { %4086 = vset.pattern.permute.xlu1 %v4687_v1  ;;  %4087 = vset.pattern.permute.xlu0 %v4686_v0  ;;  %v4119_v24 = vld [vmem:[#allocation2 + $0x64] ss:$16 sps:$4 sm:$0xff]   ;;  %v4123_v27 = vld [vmem:[#allocation2 + $0x60] ss:$16 sps:$4 sm:$0xff]  }
  0x34   :  { %102 = vperm.xlu1 %4086, %v78_v7   ;;  %272 = vperm.xlu0 %4087, %v77_v8   ;;  %v4121_v25 = vld [vmem:[#allocation2 + $0x264] ss:$16 sps:$4 sm:$0xff]   ;;  %v4124_v28 = vld [vmem:[#allocation2 + $0x260] ss:$16 sps:$4 sm:$0xff]  }
  0x35   :  { %2260 = vmatpush1.bf16.msra.mxu0 %v4111_v16  ;;  %2333 = vmatpush1.bf16.msra.mxu1 %v4112_v17  ;;  %v81_v26 = vld [vmem:[%s5712_s0 + $0x30] sm:$0xff]  ;;  %v4789_v59 = vld [vmem:[%s5714_s2] sm:$0xff] }
  0x36   :  { %2261 = vmatprep.subr.bf16.mxu0 %v4113_v18  ;;  %2334 = vmatprep.subr.bf16.mxu1 %v4115_v19  ;;  %v4125_v29 = vld [vmem:[#allocation2 + $0x44] ss:$16 sps:$4 sm:$0xff]   ;;  %v4129_v31 = vld [vmem:[#allocation2 + $0x40] ss:$16 sps:$4 sm:$0xff]   ;;  %v4803_v19 = vsub.s32 2, %v128_v56 }
  0x37   :  { %v4127_v30 = vld [vmem:[#allocation2 + $0x244] ss:$16 sps:$4 sm:$0xff]   ;;  %v4130_v32 = vld [vmem:[#allocation2 + $0x240] ss:$16 sps:$4 sm:$0xff]  }
  0x38   :  { %4089 = vset.pattern.permute.xlu1 %v4686_v0  ;;  %4088 = vset.pattern.permute.xlu0 %v4687_v1  ;;  %v4131_v33 = vld [vmem:[#allocation2 + $0x24] ss:$16 sps:$4 sm:$0xff]   ;;  %v4135_v35 = vld [vmem:[#allocation2 + $0x20] ss:$16 sps:$4 sm:$0xff]   ;;  %5756 = vst [vmem:[#allocation14_spill] sm:$0xff] %v4803_v19 }
  0x39   :  { %276 = vperm.xlu1 %4089, %v78_v7   ;;  %97 = vperm.xlu0 %4088, %v77_v8   ;;  %v4133_v34 = vld [vmem:[#allocation2 + $0x224] ss:$16 sps:$4 sm:$0xff]   ;;  %v4136_v36 = vld [vmem:[#allocation2 + $0x220] ss:$16 sps:$4 sm:$0xff]  }
  0x3a   :  { %2262 = vmatpush1.bf16.msra.mxu0 %v4117_v22  ;;  %2335 = vmatpush1.bf16.msra.mxu1 %v4118_v23  ;;  %v4137_v37 = vld [vmem:[#allocation2 + $0x4] ss:$16 sps:$4 sm:$0xff]   ;;  %v4141_v40 = vld [vmem:[#allocation2] ss:$16 sps:$4 sm:$0xff]   ;;  %v309_v22 = vsub.s32 7, %v128_v56  ;;  %v4810_v23 = vsub.s32 0, %v128_v56 }
  0x3b   :  { %2263 = vmatprep.subr.bf16.mxu0 %v4119_v24  ;;  %2336 = vmatprep.subr.bf16.mxu1 %v4121_v25  ;;  %v4139_v39 = vld [vmem:[#allocation2 + $0x204] ss:$16 sps:$4 sm:$0xff]   ;;  %v4142_v41 = vld [vmem:[#allocation2 + $0x200] ss:$16 sps:$4 sm:$0xff]   ;;  %v4813_v25 = vsub.s32 1, %v128_v56 }
  0x3c   :  { %v4143_v42 = vld [vmem:[#allocation2 + $0x1e4] ss:$16 sps:$4 sm:$0xff]   ;;  %v4147_v44 = vld [vmem:[#allocation2 + $0x1e0] ss:$16 sps:$4 sm:$0xff]   ;;  %5758 = vst [vmem:[#allocation16_spill] sm:$0xff] %v4810_v23 }
  0x3d   :  { %4090 = vset.pattern.permute.xlu1 %v4687_v1  ;;  %112 = vperm.xlu0 %4088, %v80_v21   ;;  %v4145_v43 = vld [vmem:[#allocation2 + $0x3e4] ss:$16 sps:$4 sm:$0xff]   ;;  %v4148_v45 = vld [vmem:[#allocation2 + $0x3e0] ss:$16 sps:$4 sm:$0xff]   ;;  %5759 = vst [vmem:[#allocation17_spill] sm:$0xff] %v4813_v25 }
  0x3e   :  { %107 = vperm.xlu1 %4090, %v79_v20   ;;  %2264 = vmatpush1.bf16.msra.mxu0 %v4123_v27  ;;  %v4149_v46 = vld [vmem:[#allocation2 + $0x1c4] ss:$16 sps:$4 sm:$0xff]   ;;  %v4153_v48 = vld [vmem:[#allocation2 + $0x1c0] ss:$16 sps:$4 sm:$0xff]  }
  0x3f   :  { %2337 = vmatpush1.bf16.msra.mxu1 %v4124_v28  ;;  %2265 = vmatprep.subr.bf16.mxu0 %v4125_v29  ;;  %v4151_v47 = vld [vmem:[#allocation2 + $0x3c4] ss:$16 sps:$4 sm:$0xff]   ;;  %v4154_v49 = vld [vmem:[#allocation2 + $0x3c0] ss:$16 sps:$4 sm:$0xff]   ;;  %v305_v28 = vsub.s32 5, %v128_v56  ;;  %v4819_v29 = vrot.slane %v4789_v59, %v4813_v25 }
  0x40   :  { %2338 = vmatprep.subr.bf16.mxu1 %v4127_v30  ;;  %v4155_v50 = vld [vmem:[#allocation2 + $0x1a4] ss:$16 sps:$4 sm:$0xff]   ;;  %v4159_v53 = vld [vmem:[#allocation2 + $0x1a0] ss:$16 sps:$4 sm:$0xff]  }
  0x41   :  { %117 = vperm.xlu0 %4088, %v81_v26   ;;  %v4157_v52 = vld [vmem:[#allocation2 + $0x3a4] ss:$16 sps:$4 sm:$0xff]   ;;  %v4160_v54 = vld [vmem:[#allocation2 + $0x3a0] ss:$16 sps:$4 sm:$0xff]  }
  0x42   :  { %4091 = vset.pattern.permute.xlu1 %v4686_v0  ;;  %2266 = vmatpush1.bf16.msra.mxu0 %v4129_v31  ;;  %v4161_v55 = vld [vmem:[#allocation2 + $0x184] ss:$16 sps:$4 sm:$0xff]   ;;  %v4165_v58 = vld [vmem:[#allocation2 + $0x180] ss:$16 sps:$4 sm:$0xff]  }
  0x43   :  { %280 = vperm.xlu1 %4091, %v79_v20   ;;  %2339 = vmatpush1.bf16.msra.mxu1 %v4130_v32  ;;  %v4163_v57 = vld [vmem:[#allocation2 + $0x384] ss:$16 sps:$4 sm:$0xff]   ;;  %v4166_v60 = vld [vmem:[#allocation2 + $0x380] ss:$16 sps:$4 sm:$0xff]   ;;  %v4805_v20 = vsub.s32 3, %v128_v56  ;;  %v84_v32 = vld [vmem:[%s5713_s1 + $0x8] sm:$0xff] }
  0x44   :  { %2267 = vmatprep.subr.bf16.mxu0 %v4131_v33  ;;  %2340 = vmatprep.subr.bf16.mxu1 %v4133_v34  ;;  %v4167_v61 = vld [vmem:[#allocation2 + $0x164] ss:$16 sps:$4 sm:$0xff]   ;;  %v4171_v2 = vld [vmem:[#allocation2 + $0x160] ss:$16 sps:$4 sm:$0xff]  }
  0x45   :  { %4093 = vset.pattern.permute.xlu0 %v4686_v0  ;;  %v4169_v63 = vld [vmem:[#allocation2 + $0x364] ss:$16 sps:$4 sm:$0xff]   ;;  %v4172_v4 = vld [vmem:[#allocation2 + $0x360] ss:$16 sps:$4 sm:$0xff]   ;;  %5757 = vst [vmem:[#allocation15_spill] sm:$0xff] %v4805_v20  ;;  %v4823_v31 = vrot.slane %v4789_v59, %v4805_v20 }
  0x46   :  { %288 = vperm.xlu0 %4093, %v81_v26   ;;  %2268 = vmatpush1.bf16.msra.mxu0 %v4135_v35  ;;  %v4173_v5 = vld [vmem:[#allocation2 + $0x144] ss:$16 sps:$4 sm:$0xff]   ;;  %v4177_v7 = vld [vmem:[#allocation2 + $0x140] ss:$16 sps:$4 sm:$0xff]  }
  0x47   :  { %284 = vperm.xlu1 %4091, %v80_v21   ;;  %2341 = vmatpush1.bf16.msra.mxu1 %v4136_v36  ;;  %v4175_v6 = vld [vmem:[#allocation2 + $0x344] ss:$16 sps:$4 sm:$0xff]   ;;  %v4178_v8 = vld [vmem:[#allocation2 + $0x340] ss:$16 sps:$4 sm:$0xff]  }
  0x48   :  { %2269 = vmatprep.subr.bf16.mxu0 %v4137_v37  ;;  %2342 = vmatprep.subr.bf16.mxu1 %v4139_v39  ;;  %v4179_v9 = vld [vmem:[#allocation2 + $0x124] ss:$16 sps:$4 sm:$0xff]   ;;  %v4183_v11 = vld [vmem:[#allocation2 + $0x120] ss:$16 sps:$4 sm:$0xff]  }
  0x49   :  { %v4181_v10 = vld [vmem:[#allocation2 + $0x324] ss:$16 sps:$4 sm:$0xff]   ;;  %v4184_v12 = vld [vmem:[#allocation2 + $0x320] ss:$16 sps:$4 sm:$0xff]  }
  0x4a   :  { %2270 = vmatpush1.bf16.msra.mxu0 %v4141_v40  ;;  %v4185_v13 = vld [vmem:[#allocation2 + $0x104] ss:$16 sps:$4 sm:$0xff]   ;;  %v4189_v15 = vld [vmem:[#allocation2 + $0x100] ss:$16 sps:$4 sm:$0xff]  }
  0x4b   :  { %4092 = vset.pattern.permute.xlu1 %v4687_v1  ;;  %2343 = vmatpush1.bf16.msra.mxu1 %v4142_v41  ;;  %v4797_v1 = vrot.slane %v4789_v59, %v4791_v62  ;;  %v4187_v14 = vld [vmem:[#allocation2 + $0x304] ss:$16 sps:$4 sm:$0xff]   ;;  %v4190_v16 = vld [vmem:[#allocation2 + $0x300] ss:$16 sps:$4 sm:$0xff]   ;;  %v150_v41 = vrot.slane %v84_v32, %v4803_v19 }
  0x4c   :  { %122 = vperm.xlu1 %4092, %v82_v38   ;;  %2271 = vmatprep.subr.bf16.mxu0 %v4143_v42  ;;  %v4193_v17 = vld [vmem:[#allocation2 + $0x4e4] ss:$16 sps:$4 sm:$0xff]   ;;  %v318_v42 = vrot.slane %v84_v32, %v4805_v20 }
  0x4d   :  { %2344 = vmatprep.subr.bf16.mxu1 %v4145_v43  ;;  %5754 = vst [vmem:[#allocation12_spill] sm:$0xff] %v4797_v1  ;;  %v4196_v18 = vld [vmem:[#allocation2 + $0x6e4] ss:$16 sps:$4 sm:$0xff]  }
  0x4e   :  { %2272 = vmatpush2.bf16.msra.mxu0 %v4147_v44  ;;  %v83_v21 = vld [vmem:[%s5713_s1] sm:$0xff]  ;;  %v326_v44 = vrot.slane %v84_v32, %v309_v22 }
  0x4f   :  { %2345 = vmatpush2.bf16.msra.mxu1 %v4148_v45  ;;  %2273 = vmatprep.subr.bf16.mxu0 %v4149_v46  ;;  %v134_v24 = vrot.slane %v83_v21, %v4803_v19  ;;  %v302_v26 = vrot.slane %v83_v21, %v4805_v20  ;;  %v310_v30 = vrot.slane %v83_v21, %v309_v22 }
  0x50   :  { %4094 = vset.pattern.permute.xlu1 %v4686_v0  ;;  %2346 = vmatprep.subr.bf16.mxu1 %v4151_v47  ;;  %v4793_v0 = vsub.s32 6, %v128_v56  ;;  %v130_v35 = vrot.slane %v83_v21, %v4810_v23  ;;  %v298_v36 = vrot.slane %v83_v21, %v4813_v25  ;;  %v138_v39 = vrot.slane %v83_v21, %v4791_v62 }
  0x51   :  { %292 = vperm.xlu1 %4094, %v82_v38   ;;  %v4829_v33 = vrot.slane %v134_v24, %v4810_v23  ;;  %v4832_v34 = vrot.slane %v302_v26, %v4813_v25  ;;  %v4841_v38 = vrot.slane %v4789_v59, %v4810_v23  ;;  %v306_v40 = vrot.slane %v83_v21, %v305_v28 }
  0x52   :  { %2274 = vmatpush2.bf16.msra.mxu0 %v4153_v48  ;;  %v4801_v3 = vrot.slane %v4789_v59, %v4793_v0  ;;  %v142_v27 = vrot.slane %v83_v21, %v4793_v0  ;;  %v158_v43 = vrot.slane %v84_v32, %v4793_v0  ;;  %v146_v45 = vrot.slane %v84_v32, %v4810_v23 }
  0x53   :  { %2347 = vmatpush2.bf16.msra.mxu1 %v4154_v49  ;;  %2275 = vmatprep.subr.bf16.mxu0 %v4155_v50  ;;  %v314_v46 = vrot.slane %v84_v32, %v4813_v25  ;;  %v154_v47 = vrot.slane %v84_v32, %v4791_v62  ;;  %v322_v48 = vrot.slane %v84_v32, %v305_v28 }
  0x54   :  { %2348 = vmatprep.subr.bf16.mxu1 %v4157_v52  ;;  %5755 = vst [vmem:[#allocation13_spill] sm:$0xff] %v4801_v3  ;;  %v4837_v37 = vrot.slane %v142_v27, %v4810_v23  ;;  %v4851_v49 = vrot.slane %v310_v30, %v4813_v25  ;;  %v4854_v50 = vrot.slane %v130_v35, %v4810_v23 }
  0x55   :  { %v4857_v51 = vrot.slane %v298_v36, %v4813_v25  ;;  %v4861_v52 = vrot.slane %v4789_v59, %v4803_v19  ;;  %v4873_v56 = vrot.slane %v4789_v59, %v309_v22  ;;  %v4892_v0 = vrot.slane %v146_v45, %v4810_v23 }
  0x56   :  { %2276 = vmatpush2.bf16.msra.mxu0 %v4159_v53  ;;  %v4864_v53 = vrot.slane %v138_v39, %v4810_v23 }
  0x57   :  { %2349 = vmatpush2.bf16.msra.mxu1 %v4160_v54  ;;  %2277 = vmatprep.subr.bf16.mxu0 %v4161_v55  ;;  %v4867_v54 = vrot.slane %v306_v40, %v4813_v25  ;;  %v4870_v55 = vrot.slane %v4789_v59, %v305_v28  ;;  %v4895_v59 = vrot.slane %v314_v46, %v4813_v25 }
  0x58   :  { %2350 = vmatprep.subr.bf16.mxu1 %v4163_v57  ;;  %v4876_v57 = vrot.slane %v150_v41, %v4810_v23 }
  0x5a   :  { %2278 = vmatpush2.bf16.msra.mxu0 %v4165_v58  ;;  %5760 = vst [vmem:[#allocation18_spill] sm:$0xff] %v4876_v57  ;;  %v4879_v58 = vrot.slane %v318_v42, %v4813_v25 }
  0x5b   :  { %2351 = vmatpush2.bf16.msra.mxu1 %v4166_v60  ;;  %2279 = vmatprep.subr.bf16.mxu0 %v4167_v61  ;;  %v4882_v60 = vrot.slane %v158_v43, %v4810_v23  ;;  %v4885_v61 = vrot.slane %v326_v44, %v4813_v25 }
  0x5c   :  { %2352 = vmatprep.subr.bf16.mxu1 %v4169_v63 }
  0x5e   :  { %2280 = vmatpush2.bf16.msra.mxu0 %v4171_v2  ;;  %v4898_v2 = vrot.slane %v154_v47, %v4810_v23 }
  0x5f   :  { %2353 = vmatpush2.bf16.msra.mxu1 %v4172_v4  ;;  %2281 = vmatprep.subr.bf16.mxu0 %v4173_v5  ;;  %v4901_v4 = vrot.slane %v322_v48, %v4813_v25 }
  0x60   :  { %2354 = vmatprep.subr.bf16.mxu1 %v4175_v6 }
  0x62   :  { %2282 = vmatpush2.bf16.msra.mxu0 %v4177_v7 }
  0x63   :  { %2355 = vmatpush2.bf16.msra.mxu1 %v4178_v8  ;;  %2283 = vmatprep.subr.bf16.mxu0 %v4179_v9 }
  0x64   :  { %2356 = vmatprep.subr.bf16.mxu1 %v4181_v10 }
  0x66   :  { %2284 = vmatpush2.bf16.msra.mxu0 %v4183_v11 }
  0x67   :  { %2357 = vmatpush2.bf16.msra.mxu1 %v4184_v12  ;;  %2285 = vmatprep.subr.bf16.mxu0 %v4185_v13 }
  0x68   :  { %2358 = vmatprep.subr.bf16.mxu1 %v4187_v14 }
  0x6a   :  { %2286 = vmatpush2.bf16.msra.mxu0 %v4189_v15 }
  0x6b   :  { %2359 = vmatpush2.bf16.msra.mxu1 %v4190_v16  ;;  %2401 = vmatprep.subr.bf16.mxu0 %v4193_v17 }
  0x6c   :  { %2474 = vmatprep.subr.bf16.mxu1 %v4196_v18 }
  0xa6   :  { %v4887_v62 = vpop.permute.xlu1 %264  ;;  %v4889_v63 = vpop.permute.xlu0 %87 }
  0xa7   :  { %v200_v5 = vmul.f32 %v4829_v33, %v4889_v63  ;;  %v368_v6 = vmul.f32 %v4832_v34, %v4887_v62  ;;  %v202_v7 = vmul.f32 %v4837_v37, %v4889_v63  ;;  %v370_v8 = vmul.f32 %v4851_v49, %v4887_v62 }
  0xa8   :  { %v199_v9 = vmul.f32 %v4854_v50, %v4889_v63  ;;  %v367_v10 = vmul.f32 %v4857_v51, %v4887_v62  ;;  %v201_v11 = vmul.f32 %v4864_v53, %v4889_v63  ;;  %v369_v12 = vmul.f32 %v4867_v54, %v4887_v62 }
  0xa9   :  { %v432_v13 = vadd.f32 %v368_v6, %v200_v5  ;;  %v434_v14 = vadd.f32 %v370_v8, %v202_v7  ;;  %v4921_v15 = vmul.f32 %v4876_v57, %v4889_v63  ;;  %v4925_v16 = vmul.f32 %v4879_v58, %v4887_v62 }
  0xaa   :  { %v4927_v17 = vpop.permute.xlu1 %268  ;;  %v4929_v18 = vpop.permute.xlu0 %92  ;;  %v431_v21 = vadd.f32 %v367_v10, %v199_v9  ;;  %v433_v22 = vadd.f32 %v369_v12, %v201_v11  ;;  %v4933_v24 = vmul.f32 %v4882_v60, %v4889_v63  ;;  %v4937_v26 = vmul.f32 %v4885_v61, %v4887_v62 }
  0xab   :  { %v208_v27 = vmul.f32 %v4829_v33, %v4929_v18  ;;  %v376_v28 = vmul.f32 %v4832_v34, %v4927_v17  ;;  %v538_v30 = vadd.f32 %v4819_v29, %v432_v13  ;;  %v210_v32 = vmul.f32 %v4837_v37, %v4929_v18 }
  0xac   :  { %v378_v35 = vmul.f32 %v4851_v49, %v4927_v17  ;;  %v540_v36 = vadd.f32 %v4823_v31, %v434_v14  ;;  %v207_v39 = vmul.f32 %v4854_v50, %v4929_v18  ;;  %v375_v40 = vmul.f32 %v4857_v51, %v4927_v17 }
  0xad   :  { %v440_v41 = vadd.f32 %v376_v28, %v208_v27  ;;  %v602_v42 = vmax.f32 %v538_v30, 0.0  ;;  %v537_v43 = vadd.f32 %v4841_v38, %v431_v21  ;;  %v209_v44 = vmul.f32 %v4864_v53, %v4929_v18 }
  0xae   :  { %v442_v45 = vadd.f32 %v378_v35, %v210_v32  ;;  %v604_v46 = vmax.f32 %v540_v36, 0.0  ;;  %v439_v47 = vadd.f32 %v375_v40, %v207_v39  ;;  %v377_v48 = vmul.f32 %v4867_v54, %v4927_v17  ;;  %v4191_v32 = vld [vmem:[#allocation2 + $0x4e0] ss:$16 sps:$4 sm:$0xff]   ;;  %v4199_v39 = vld [vmem:[#allocation2 + $0x4c4] ss:$16 sps:$4 sm:$0xff]  }
  0xaf   :  { %v4958_v5 = vpop.permute.xlu1 %102  ;;  %v546_v6 = vadd.f32 %v4819_v29, %v440_v41  ;;  %v601_v7 = vmax.f32 %v537_v43, 0.0  ;;  %v539_v8 = vadd.f32 %v4861_v52, %v433_v22  ;;  %v4962_v9 = vpop.permute.xlu0 %272  ;;  %v4966_v10 = vmul.f32 %v4876_v57, %v4929_v18  ;;  %v4194_v43 = vld [vmem:[#allocation2 + $0x6e0] ss:$16 sps:$4 sm:$0xff]  }
  0xb0   :  { %5761 = vst [vmem:[#allocation19_spill] sm:$0xff] %v4958_v5  ;;  %5762 = vst [vmem:[#allocation20_spill] sm:$0xff] %v4962_v9  ;;  %v548_v11 = vadd.f32 %v4823_v31, %v442_v45  ;;  %v545_v12 = vadd.f32 %v4841_v38, %v439_v47  ;;  %v441_v13 = vadd.f32 %v377_v48, %v209_v44 }
  0xb1   :  { %v224_v14 = vmul.f32 %v4829_v33, %v4958_v5  ;;  %v610_v21 = vmax.f32 %v546_v6, 0.0  ;;  %v603_v27 = vmax.f32 %v539_v8, 0.0  ;;  %v384_v28 = vmul.f32 %v4832_v34, %v4962_v9 }
  0xb2   :  { %v226_v22 = vmul.f32 %v4837_v37, %v4958_v5  ;;  %v612_v30 = vmax.f32 %v548_v11, 0.0  ;;  %v609_v35 = vmax.f32 %v545_v12, 0.0  ;;  %v547_v36 = vadd.f32 %v4861_v52, %v441_v13  ;;  %v4202_v12 = vld [vmem:[#allocation2 + $0x6c4] ss:$16 sps:$4 sm:$0xff]  }
  0xb3   :  { %v386_v40 = vmul.f32 %v4851_v49, %v4962_v9  ;;  %v4979_v41 = vpack.c.bf16 %v610_v21, %v602_v42  ;;  %v223_v44 = vmul.f32 %v4854_v50, %v4958_v5  ;;  %v383_v45 = vmul.f32 %v4857_v51, %v4962_v9  ;;  %v4197_v21 = vld [vmem:[#allocation2 + $0x4c0] ss:$16 sps:$4 sm:$0xff]  }
  0xb4   :  { %v225_v47 = vmul.f32 %v4864_v53, %v4958_v5  ;;  %v4987_v48 = vpack.c.bf16 %v612_v30, %v604_v46  ;;  %v4989_v6 = vpack.c.bf16 %v609_v35, %v601_v7  ;;  %v611_v8 = vmax.f32 %v547_v36, 0.0  ;;  %v4991_v11 = vpop.permute.xlu1 %276  ;;  %v4993_v42 = vpop.permute.xlu0 %97  ;;  %v4200_v5 = vld [vmem:[#allocation2 + $0x6c0] ss:$16 sps:$4 sm:$0xff]  }
  0xb5   :  { %5763 = vst [vmem:[#allocation21_spill] sm:$0xff] %v4979_v41  ;;  %5766 = vst [vmem:[#allocation24_spill] sm:$0xff] %v4991_v11  ;;  %v385_v13 = vmul.f32 %v4867_v54, %v4962_v9  ;;  %2287 = vmatprep.mubr.bf16.mxu0 %v4979_v41  ;;  %v216_v19 = vmul.f32 %v4829_v33, %v4993_v42  ;;  %v392_v46 = vmul.f32 %v4832_v34, %v4991_v11  ;;  %v4205_v9 = vld [vmem:[#allocation2 + $0x4a4] ss:$16 sps:$4 sm:$0xff]  }
  0xb6   :  { %5764 = vst [vmem:[#allocation22_spill] sm:$0xff] %v4987_v48  ;;  %5765 = vst [vmem:[#allocation23_spill] sm:$0xff] %v4989_v6  ;;  %v218_v7 = vmul.f32 %v4837_v37, %v4993_v42  ;;  %v394_v30 = vmul.f32 %v4851_v49, %v4991_v11  ;;  %2360 = vmatprep.mubr.bf16.mxu1 %v4987_v48  ;;  %2288 = vmatmul.mubr.bf16.vlgmr.msra.gmra.mxu0 %v4989_v6 }
  0xb7   :  { %5767 = vst [vmem:[#allocation25_spill] sm:$0xff] %v4993_v42  ;;  %v5008_v35 = vpack.c.bf16 %v611_v8, %v603_v27  ;;  %v215_v36 = vmul.f32 %v4854_v50, %v4993_v42  ;;  %v391_v20 = vmul.f32 %v4857_v51, %v4991_v11  ;;  %2402 = vmatpush1.bf16.msra.mxu0 %v4191_v32  ;;  %v4203_v32 = vld [vmem:[#allocation2 + $0x4a0] ss:$16 sps:$4 sm:$0xff]  }
  0xb8   :  { %v448_v23 = vadd.f32 %v384_v28, %v216_v19  ;;  %v456_v25 = vadd.f32 %v392_v46, %v224_v14  ;;  %v450_v41 = vadd.f32 %v386_v40, %v218_v7  ;;  %v458_v3 = vadd.f32 %v394_v30, %v226_v22  ;;  %2403 = vmatprep.subr.bf16.mxu0 %v4199_v39  ;;  %v5015_v48 = vpop.permute.xlu0 %112  ;;  %v4208_v39 = vld [vmem:[#allocation2 + $0x6a4] ss:$16 sps:$4 sm:$0xff]   ;;  %v4206_v46 = vld [vmem:[#allocation2 + $0x6a0] ss:$16 sps:$4 sm:$0xff]  }
  0xb9   :  { %5768 = vst [vmem:[#allocation26_spill] sm:$0xff] %v5008_v35  ;;  %2361 = vmatmul.mubr.bf16.vlgmr.msra.gmra.mxu1 %v5008_v35  ;;  %5769 = vst [vmem:[#allocation27_spill] sm:$0xff] %v5015_v48  ;;  %v447_v6 = vadd.f32 %v383_v45, %v215_v36  ;;  %v455_v27 = vadd.f32 %v391_v20, %v223_v44  ;;  %v217_v8 = vmul.f32 %v4864_v53, %v4993_v42  ;;  %v5019_v57 = vpop.permute.xlu1 %107  ;;  %v4211_v40 = vld [vmem:[#allocation2 + $0x484] ss:$16 sps:$4 sm:$0xff]  }
  0xba   :  { %2475 = vmatpush1.bf16.msra.mxu1 %v4194_v43  ;;  %5770 = vst [vmem:[#allocation28_spill] sm:$0xff] %v5019_v57  ;;  %v554_v19 = vadd.f32 %v4819_v29, %v448_v23  ;;  %v562_v14 = vadd.f32 %v4819_v29, %v456_v25  ;;  %v556_v28 = vadd.f32 %v4823_v31, %v450_v41  ;;  %v4214_v41 = vld [vmem:[#allocation2 + $0x684] ss:$16 sps:$4 sm:$0xff]  }
  0xbb   :  { %v564_v22 = vadd.f32 %v4823_v31, %v458_v3  ;;  %2476 = vmatprep.subr.bf16.mxu1 %v4202_v12  ;;  %v553_v20 = vadd.f32 %v4841_v38, %v447_v6  ;;  %v561_v44 = vadd.f32 %v4841_v38, %v455_v27  ;;  %v393_v43 = vmul.f32 %v4867_v54, %v4991_v11  ;;  %v4209_v6 = vld [vmem:[#allocation2 + $0x480] ss:$16 sps:$4 sm:$0xff]  }
  0xbc   :  { %v449_v45 = vadd.f32 %v385_v13, %v217_v8  ;;  %2404 = vmatpush1.bf16.msra.mxu0 %v4197_v21  ;;  %v618_v23 = vmax.f32 %v554_v19, 0.0  ;;  %v626_v7 = vmax.f32 %v562_v14, 0.0  ;;  %v620_v25 = vmax.f32 %v556_v28, 0.0 }
  0xbd   :  { %v628_v30 = vmax.f32 %v564_v22, 0.0  ;;  %2405 = vmatprep.subr.bf16.mxu0 %v4205_v9  ;;  %v617_v3 = vmax.f32 %v553_v20, 0.0  ;;  %v625_v12 = vmax.f32 %v561_v44, 0.0  ;;  %v457_v36 = vadd.f32 %v393_v43, %v225_v47  ;;  %v4217_v20 = vld [vmem:[#allocation2 + $0x464] ss:$16 sps:$4 sm:$0xff]  }
  0xbe   :  { %v555_v35 = vadd.f32 %v4861_v52, %v449_v45  ;;  %2477 = vmatpush1.bf16.msra.mxu1 %v4200_v5  ;;  %v5030_v27 = vpack.c.bf16 %v626_v7, %v618_v23  ;;  %v232_v13 = vmul.f32 %v4829_v33, %v5019_v57  ;;  %v240_v21 = vmul.f32 %v4829_v33, %v5015_v48  ;;  %v5038_v9 = vpop.permute.xlu1 %280  ;;  %v5043_v5 = vpop.permute.xlu0 %117  ;;  %v4212_v45 = vld [vmem:[#allocation2 + $0x680] ss:$16 sps:$4 sm:$0xff]  }
  0xbf   :  { %v5032_v42 = vpack.c.bf16 %v628_v30, %v620_v25  ;;  %2478 = vmatprep.subr.bf16.mxu1 %v4208_v39  ;;  %5773 = vst [vmem:[#allocation31_spill] sm:$0xff] %v5038_v9  ;;  %v5040_v8 = vpack.c.bf16 %v625_v12, %v617_v3  ;;  %v563_v47 = vadd.f32 %v4861_v52, %v457_v36  ;;  %v4215_v30 = vld [vmem:[#allocation2 + $0x460] ss:$16 sps:$4 sm:$0xff]   ;;  %v4220_v3 = vld [vmem:[#allocation2 + $0x664] ss:$16 sps:$4 sm:$0xff]  }
  0xc0   :  { %5771 = vst [vmem:[#allocation29_spill] sm:$0xff] %v5030_v27  ;;  %v619_v19 = vmax.f32 %v555_v35, 0.0  ;;  %v234_v14 = vmul.f32 %v4837_v37, %v5019_v57  ;;  %2406 = vmatpush1.bf16.msra.mxu0 %v4203_v32  ;;  %2297 = vmatprep.mubr.bf16.mxu0 %v5030_v27  ;;  %v400_v28 = vmul.f32 %v4832_v34, %v5038_v9  ;;  %v4223_v36 = vld [vmem:[#allocation2 + $0x444] ss:$16 sps:$4 sm:$0xff]  }
  0xc1   :  { %5772 = vst [vmem:[#allocation30_spill] sm:$0xff] %v5032_v42  ;;  %5774 = vst [vmem:[#allocation32_spill] sm:$0xff] %v5040_v8  ;;  %v242_v22 = vmul.f32 %v4837_v37, %v5015_v48  ;;  %v402_v39 = vmul.f32 %v4851_v49, %v5038_v9  ;;  %2407 = vmatprep.subr.bf16.mxu0 %v4211_v40  ;;  %2370 = vmatprep.mubr.bf16.mxu1 %v5032_v42  ;;  %v627_v35 = vmax.f32 %v563_v47, 0.0 }
  0xc2   :  { %v231_v44 = vmul.f32 %v4854_v50, %v5019_v57  ;;  %v239_v32 = vmul.f32 %v4854_v50, %v5015_v48  ;;  %v399_v43 = vmul.f32 %v4857_v51, %v5038_v9  ;;  %2479 = vmatpush1.bf16.msra.mxu1 %v4206_v46  ;;  %2298 = vmatmul.mubr.bf16.gmra.mxu0 %v5040_v8  ;;  %v5064_v25 = vpop.permute.xlu1 %284 }
  0xc3   :  { %v464_v23 = vadd.f32 %v400_v28, %v232_v13  ;;  %v466_v7 = vadd.f32 %v402_v39, %v234_v14  ;;  %v233_v40 = vmul.f32 %v4864_v53, %v5019_v57  ;;  %2480 = vmatprep.subr.bf16.mxu1 %v4214_v41  ;;  %v5066_v12 = vpack.c.bf16 %v627_v35, %v619_v19  ;;  %v4218_v13 = vld [vmem:[#allocation2 + $0x660] ss:$16 sps:$4 sm:$0xff]   ;;  %v4226_v39 = vld [vmem:[#allocation2 + $0x644] ss:$16 sps:$4 sm:$0xff]   ;;  %v5079_v35 = vpop.permute.xlu0 %288 }
  0xc4   :  { %v463_v47 = vadd.f32 %v399_v43, %v231_v44  ;;  %v241_v46 = vmul.f32 %v4864_v53, %v5015_v48  ;;  %v401_v8 = vmul.f32 %v4867_v54, %v5038_v9  ;;  %2408 = vmatpush1.bf16.msra.mxu0 %v4209_v6  ;;  %v408_v14 = vmul.f32 %v4832_v34, %v5064_v25 }
  0xc5   :  { %5775 = vst [vmem:[#allocation33_spill] sm:$0xff] %v5066_v12  ;;  %v570_v41 = vadd.f32 %v4819_v29, %v464_v23  ;;  %v410_v28 = vmul.f32 %v4851_v49, %v5064_v25  ;;  %v572_v19 = vadd.f32 %v4823_v31, %v466_v7  ;;  %2409 = vmatprep.subr.bf16.mxu0 %v4217_v20  ;;  %v4221_v23 = vld [vmem:[#allocation2 + $0x440] ss:$16 sps:$4 sm:$0xff]  }
  0xc6   :  { %2371 = vmatmul.mubr.bf16.gmra.mxu1 %v5066_v12  ;;  %v407_v6 = vmul.f32 %v4857_v51, %v5064_v25  ;;  %v569_v44 = vadd.f32 %v4841_v38, %v463_v47  ;;  %v409_v43 = vmul.f32 %v4867_v54, %v5064_v25  ;;  %v472_v42 = vadd.f32 %v408_v14, %v240_v21 }
  0xc7   :  { %2481 = vmatpush1.bf16.msra.mxu1 %v4212_v45  ;;  %v634_v27 = vmax.f32 %v570_v41, 0.0  ;;  %v474_v9 = vadd.f32 %v410_v28, %v242_v22  ;;  %v636_v7 = vmax.f32 %v572_v19, 0.0  ;;  %v465_v48 = vadd.f32 %v401_v8, %v233_v40  ;;  %v5086_v11 = vpop.permute.xlu1 %122  ;;  %v4229_v22 = vld [vmem:[#allocation2 + $0x424] ss:$16 sps:$4 sm:$0xff]  }
  0xc8   :  { %2482 = vmatprep.subr.bf16.mxu1 %v4220_v3  ;;  %v471_v20 = vadd.f32 %v407_v6, %v239_v32  ;;  %v633_v12 = vmax.f32 %v569_v44, 0.0  ;;  %v473_v57 = vadd.f32 %v409_v43, %v241_v46  ;;  %2410 = vmatpush1.bf16.msra.mxu0 %v4215_v30  ;;  %v578_v1 = vadd.f32 %v4819_v29, %v472_v42  ;;  %v4224_v42 = vld [vmem:[#allocation2 + $0x640] ss:$16 sps:$4 sm:$0xff]  }
  0xc9   :  { %v580_v47 = vadd.f32 %v4823_v31, %v474_v9  ;;  %v248_v45 = vmul.f32 %v4829_v33, %v5043_v5  ;;  %v416_v21 = vmul.f32 %v4832_v34, %v5079_v35  ;;  %2411 = vmatprep.subr.bf16.mxu0 %v4223_v36  ;;  %v571_v8 = vadd.f32 %v4861_v52, %v465_v48  ;;  %v4227_v9 = vld [vmem:[#allocation2 + $0x420] ss:$16 sps:$4 sm:$0xff]   ;;  %v4232_v36 = vld [vmem:[#allocation2 + $0x624] ss:$16 sps:$4 sm:$0xff]  }
  0xca   :  { %v577_v32 = vadd.f32 %v4841_v38, %v471_v20  ;;  %v579_v40 = vadd.f32 %v4861_v52, %v473_v57  ;;  %v256_v30 = vmul.f32 %v4829_v33, %v5086_v11  ;;  %v642_v3 = vmax.f32 %v578_v1, 0.0  ;;  %v4230_v48 = vld [vmem:[#allocation2 + $0x620] ss:$16 sps:$4 sm:$0xff]   ;;  %v4235_v1 = vld [vmem:[#allocation2 + $0x404] ss:$16 sps:$4 sm:$0xff]  }
  0xcb   :  { %2483 = vmatpush1.bf16.msra.mxu1 %v4218_v13  ;;  %v644_v46 = vmax.f32 %v580_v47, 0.0  ;;  %v480_v14 = vadd.f32 %v416_v21, %v248_v45  ;;  %v250_v41 = vmul.f32 %v4837_v37, %v5043_v5  ;;  %v635_v19 = vmax.f32 %v571_v8, 0.0 }
  0xcc   :  { %2484 = vmatprep.subr.bf16.mxu1 %v4226_v39  ;;  %v641_v28 = vmax.f32 %v577_v32, 0.0  ;;  %v643_v6 = vmax.f32 %v579_v40, 0.0  ;;  %v258_v57 = vmul.f32 %v4837_v37, %v5086_v11  ;;  %2412 = vmatpush1.bf16.msra.mxu0 %v4221_v23  ;;  %v5103_v33 = vpack.c.bf16 %v642_v3, %v634_v27  ;;  %v5110_v39 = vpop.permute.xlu1 %292  ;;  %v4238_v37 = vld [vmem:[#allocation2 + $0x604] ss:$16 sps:$4 sm:$0xff]  }
  0xcd   :  { %v5105_v13 = vpack.c.bf16 %v644_v46, %v636_v7  ;;  %v586_v44 = vadd.f32 %v4819_v29, %v480_v14  ;;  %v418_v43 = vmul.f32 %v4851_v49, %v5079_v35  ;;  %2413 = vmatprep.subr.bf16.mxu0 %v4229_v22  ;;  %v247_v27 = vmul.f32 %v4854_v50, %v5043_v5  ;;  %v4233_v7 = vld [vmem:[#allocation2 + $0x400] ss:$16 sps:$4 sm:$0xff]   ;;  %v4241_v40 = vld [vmem:[#allocation2 + $0x5e4] ss:$16 sps:$4 sm:$0xff]  }
  0xce   :  { %v5112_v20 = vpack.c.bf16 %v641_v28, %v633_v12  ;;  %v5114_v47 = vpack.c.bf16 %v643_v6, %v635_v19  ;;  %v255_v23 = vmul.f32 %v4854_v50, %v5086_v11  ;;  %2307 = vmatprep.mubr.bf16.mxu0 %v5103_v33  ;;  %v424_v45 = vmul.f32 %v4832_v34, %v5110_v39  ;;  %v4236_v14 = vld [vmem:[#allocation2 + $0x600] ss:$16 sps:$4 sm:$0xff]   ;;  %v4244_v19 = vld [vmem:[#allocation2 + $0x7e4] ss:$16 sps:$4 sm:$0xff]  }
  0xcf   :  { %2485 = vmatpush1.bf16.msra.mxu1 %v4224_v42  ;;  %v426_v12 = vmul.f32 %v4851_v49, %v5110_v39  ;;  %v482_v21 = vadd.f32 %v418_v43, %v250_v41  ;;  %2380 = vmatprep.mubr.bf16.mxu1 %v5105_v13  ;;  %v415_v22 = vmul.f32 %v4857_v51, %v5079_v35  ;;  %v650_v42 = vmax.f32 %v586_v44, 0.0  ;;  %v4239_v28 = vld [vmem:[#allocation2 + $0x5e0] ss:$16 sps:$4 sm:$0xff]  }
  0xd0   :  { %2486 = vmatprep.subr.bf16.mxu1 %v4232_v36  ;;  %v423_v50 = vmul.f32 %v4857_v51, %v5110_v39  ;;  %v249_v32 = vmul.f32 %v4864_v53, %v5043_v5  ;;  %2414 = vmatpush1.bf16.msra.mxu0 %v4227_v9  ;;  %v488_v34 = vadd.f32 %v424_v45, %v256_v30 }
  0xd1   :  { %2381 = vmatmul.mubr.bf16.gmra.mxu1 %v5114_v47  ;;  %v490_v8 = vadd.f32 %v426_v12, %v258_v57  ;;  %v588_v49 = vadd.f32 %v4823_v31, %v482_v21  ;;  %2308 = vmatmul.mubr.bf16.gmra.mxu0 %v5112_v20  ;;  %v479_v3 = vadd.f32 %v415_v22, %v247_v27  ;;  %v4245_v12 = vld [vmem:[#allocation2 + $0x5c0] ss:$16 sps:$4 sm:$0xff]   ;;  %v4247_v21 = vld [vmem:[#allocation2 + $0x5c4] ss:$16 sps:$4 sm:$0xff]  }
  0xd2   :  { %2415 = vmatprep.subr.bf16.mxu0 %v4235_v1  ;;  %v487_v46 = vadd.f32 %v423_v50, %v255_v23  ;;  %v257_v51 = vmul.f32 %v4864_v53, %v5086_v11  ;;  %v594_v9 = vadd.f32 %v4819_v29, %v488_v34  ;;  %v417_v36 = vmul.f32 %v4867_v54, %v5079_v35 }
  0xd3   :  { %2487 = vmatpush1.bf16.msra.mxu1 %v4230_v48  ;;  %v596_v41 = vadd.f32 %v4823_v31, %v490_v8  ;;  %v652_v30 = vmax.f32 %v588_v49, 0.0  ;;  %v585_v6 = vadd.f32 %v4841_v38, %v479_v3  ;;  %v425_v53 = vmul.f32 %v4867_v54, %v5110_v39  ;;  %v4248_v49 = vld [vmem:[#allocation2 + $0x7c0] ss:$16 sps:$4 sm:$0xff]  }
  0xd4   :  { %2488 = vmatprep.subr.bf16.mxu1 %v4238_v37  ;;  %v593_v57 = vadd.f32 %v4841_v38, %v487_v46  ;;  %v380_v48 = vmul.f32 %v4879_v58, %v4927_v17  ;;  %2416 = vmatpush1.bf16.msra.mxu0 %v4233_v7  ;;  %v658_v29 = vmax.f32 %v594_v9, 0.0  ;;  %v481_v1 = vadd.f32 %v417_v36, %v249_v32  ;;  %v4242_v38 = vld [vmem:[#allocation2 + $0x7e0] ss:$16 sps:$4 sm:$0xff]  }
  0xd5   :  { %v660_v31 = vmax.f32 %v596_v41, 0.0  ;;  %v436_v44 = vadd.f32 %v4925_v16, %v4921_v15  ;;  %2417 = vmatprep.subr.bf16.mxu0 %v4241_v40  ;;  %v649_v43 = vmax.f32 %v585_v6, 0.0  ;;  %v489_v27 = vadd.f32 %v425_v53, %v257_v51  ;;  %v4251_v41 = vld [vmem:[#allocation2 + $0x5a0] ss:$16 sps:$4 sm:$0xff]  }
  0xd6   :  { %v657_v37 = vmax.f32 %v593_v57, 0.0  ;;  %v444_v23 = vadd.f32 %v380_v48, %v4966_v10  ;;  %v5150_v45 = vpack.c.bf16 %v658_v29, %v650_v42  ;;  %v587_v7 = vadd.f32 %v4861_v52, %v481_v1  ;;  %v4250_v10 = vld [vmem:[#allocation2 + $0x7c4] ss:$16 sps:$4 sm:$0xff]  }
  0xd7   :  { %2489 = vmatpush1.bf16.msra.mxu1 %v4236_v14  ;;  %v5152_v54 = vpack.c.bf16 %v660_v31, %v652_v30  ;;  %v542_v22 = vadd.f32 %v4870_v55, %v436_v44  ;;  %v595_v16 = vadd.f32 %v4861_v52, %v489_v27  ;;  %v214_v32 = vmul.f32 %v4882_v60, %v4929_v18  ;;  %v4253_v30 = vld [vmem:[#allocation2 + $0x5a4] ss:$16 sps:$4 sm:$0xff]   ;;  %v4257_v27 = vld [vmem:[#allocation2 + $0x580] ss:$16 sps:$4 sm:$0xff]  }
  0xd8   :  { %2490 = vmatprep.subr.bf16.mxu1 %v4244_v19  ;;  %v5156_v15 = vpack.c.bf16 %v657_v37, %v649_v43  ;;  %v550_v50 = vadd.f32 %v4870_v55, %v444_v23  ;;  %2418 = vmatpush2.bf16.msra.mxu0 %v4239_v28  ;;  %v651_v34 = vmax.f32 %v587_v7, 0.0  ;;  %v382_v40 = vmul.f32 %v4885_v61, %v4927_v17  ;;  %v4259_v19 = vld [vmem:[#allocation2 + $0x584] ss:$16 sps:$4 sm:$0xff]   ;;  %v4254_v37 = vld [vmem:[#allocation2 + $0x7a0] ss:$16 sps:$4 sm:$0xff]  }
  0xd9   :  { %2317 = vmatprep.mubr.bf16.mxu0 %v5150_v45  ;;  %v606_v8 = vmax.f32 %v542_v22, 0.0  ;;  %v438_v42 = vadd.f32 %v4937_v26, %v4933_v24  ;;  %2390 = vmatprep.mubr.bf16.mxu1 %v5152_v54  ;;  %v659_v52 = vmax.f32 %v595_v16, 0.0  ;;  %v203_v46 = vmul.f32 %v4892_v0, %v4889_v63  ;;  %v4256_v24 = vld [vmem:[#allocation2 + $0x7a4] ss:$16 sps:$4 sm:$0xff]  }
  0xda   :  { %2318 = vmatmul.mubr.bf16.gmra.mxu0 %v5156_v15  ;;  %v614_v3 = vmax.f32 %v550_v50, 0.0  ;;  %v211_v51 = vmul.f32 %v4892_v0, %v4929_v18  ;;  %2419 = vmatprep.subr.bf16.mxu0 %v4247_v21  ;;  %v446_v14 = vadd.f32 %v382_v40, %v214_v32  ;;  %v371_v26 = vmul.f32 %v4895_v59, %v4887_v62  ;;  %v5776_v23 = vld [vmem:[#allocation12_spill] sm:$0xff]  ;;  %v5778_v7 = vld [vmem:[#allocation18_spill] sm:$0xff]  ;;  %v5779_v21 = vld [vmem:[#allocation19_spill] sm:$0xff] }
  0xdb   :  { %2491 = vmatpush2.bf16.msra.mxu1 %v4242_v38  ;;  %v544_v9 = vadd.f32 %v4873_v56, %v438_v42  ;;  %v5176_v36 = vpack.c.bf16 %v659_v52, %v651_v34  ;;  %v379_v6 = vmul.f32 %v4895_v59, %v4927_v17  ;;  %v205_v57 = vmul.f32 %v4898_v2, %v4889_v63  ;;  %v4262_v16 = vld [vmem:[#allocation2 + $0x784] ss:$16 sps:$4 sm:$0xff]  }
  0xdc   :  { %v5178_v28 = vpack.c.bf16 %v614_v3, %v606_v8  ;;  %2492 = vmatprep.subr.bf16.mxu1 %v4250_v10  ;;  %v552_v53 = vadd.f32 %v4873_v56, %v446_v14  ;;  %2420 = vmatpush2.bf16.msra.mxu0 %v4245_v12  ;;  %v435_v48 = vadd.f32 %v371_v26, %v203_v46  ;;  %v4265_v50 = vld [vmem:[#allocation2 + $0x564] ss:$16 sps:$4 sm:$0xff]   ;;  %v5782_v3 = vld [vmem:[#allocation13_spill] sm:$0xff] }
  0xdd   :  { %v213_v29 = vmul.f32 %v4898_v2, %v4929_v18  ;;  %2391 = vmatmul.mubr.bf16.gmra.mxu1 %v5176_v36  ;;  %v608_v31 = vmax.f32 %v544_v9, 0.0  ;;  %v443_v1 = vadd.f32 %v379_v6, %v211_v51  ;;  %v373_v44 = vmul.f32 %v4901_v4, %v4887_v62  ;;  %2421 = vmatprep.subr.bf16.mxu0 %v4253_v30  ;;  %v5777_v18 = vld [vmem:[#allocation25_spill] sm:$0xff]  ;;  %v5780_v32 = vld [vmem:[#allocation20_spill] sm:$0xff] }
  0xde   :  { %2433 = vmatprep.mubr.bf16.mxu0 %v5178_v28  ;;  %v381_v43 = vmul.f32 %v4901_v4, %v4927_v17  ;;  %v616_v63 = vmax.f32 %v552_v53, 0.0  ;;  %v541_v38 = vadd.f32 %v5776_v23, %v435_v48  ;;  %v220_v12 = vmul.f32 %v5778_v7, %v5777_v18  ;;  %v5781_v40 = vld [vmem:[#allocation24_spill] sm:$0xff] }
  0xdf   :  { %2493 = vmatpush2.bf16.msra.mxu1 %v4248_v49  ;;  %v228_v22 = vmul.f32 %v5778_v7, %v5779_v21  ;;  %v549_v62 = vadd.f32 %v5776_v23, %v443_v1  ;;  %v437_v10 = vadd.f32 %v373_v44, %v205_v57  ;;  %v388_v34 = vmul.f32 %v4879_v58, %v5780_v32  ;;  %v4260_v9 = vld [vmem:[#allocation2 + $0x780] ss:$16 sps:$4 sm:$0xff]  }
  0xe0   :  { %2494 = vmatprep.subr.bf16.mxu1 %v4256_v24  ;;  %v445_v17 = vadd.f32 %v381_v43, %v213_v29  ;;  %v5201_v8 = vpack.c.bf16 %v616_v63, %v608_v31  ;;  %2422 = vmatpush2.bf16.msra.mxu0 %v4251_v41  ;;  %v605_v49 = vmax.f32 %v541_v38, 0.0  ;;  %v396_v42 = vmul.f32 %v4879_v58, %v5781_v40  ;;  %v4263_v30 = vld [vmem:[#allocation2 + $0x560] ss:$16 sps:$4 sm:$0xff]   ;;  %v4268_v24 = vld [vmem:[#allocation2 + $0x764] ss:$16 sps:$4 sm:$0xff]  }
  0xe1   :  { %2423 = vmatprep.subr.bf16.mxu0 %v4259_v19  ;;  %v613_v52 = vmax.f32 %v549_v62, 0.0  ;;  %v543_v46 = vadd.f32 %v5782_v3, %v437_v10  ;;  %v452_v14 = vadd.f32 %v388_v34, %v220_v12  ;;  %v222_v41 = vmul.f32 %v4882_v60, %v5777_v18  ;;  %v4271_v19 = vld [vmem:[#allocation2 + $0x544] ss:$16 sps:$4 sm:$0xff]   ;;  %v4266_v38 = vld [vmem:[#allocation2 + $0x760] ss:$16 sps:$4 sm:$0xff]  }
  0xe2   :  { %v551_v51 = vadd.f32 %v5782_v3, %v445_v17  ;;  %2506 = vmatprep.mubr.bf16.mxu1 %v5201_v8  ;;  %v460_v26 = vadd.f32 %v396_v42, %v228_v22  ;;  %v390_v6 = vmul.f32 %v4885_v61, %v5780_v32  ;;  %v230_v29 = vmul.f32 %v4882_v60, %v5779_v21  ;;  %v4269_v12 = vld [vmem:[#allocation2 + $0x540] ss:$16 sps:$4 sm:$0xff]   ;;  %v4274_v62 = vld [vmem:[#allocation2 + $0x744] ss:$16 sps:$4 sm:$0xff]  }
  0xe3   :  { %2495 = vmatpush2.bf16.msra.mxu1 %v4254_v37  ;;  %v5212_v57 = vpack.c.bf16 %v613_v52, %v605_v49  ;;  %v607_v53 = vmax.f32 %v543_v46, 0.0  ;;  %v5217_v31 = vadd.f32 %v4870_v55, %v452_v14  ;;  %v398_v44 = vmul.f32 %v4885_v61, %v5781_v40  ;;  %v4277_v10 = vld [vmem:[#allocation2 + $0x524] ss:$16 sps:$4 sm:$0xff]  }
  0xe4   :  { %2496 = vmatprep.subr.bf16.mxu1 %v4262_v16  ;;  %v615_v48 = vmax.f32 %v551_v51, 0.0  ;;  %2424 = vmatpush2.bf16.msra.mxu0 %v4257_v27  ;;  %v5220_v1 = vadd.f32 %v4870_v55, %v460_v26  ;;  %v219_v43 = vmul.f32 %v4892_v0, %v5777_v18  ;;  %v227_v37 = vmul.f32 %v4892_v0, %v5779_v21  ;;  %v4272_v26 = vld [vmem:[#allocation2 + $0x740] ss:$16 sps:$4 sm:$0xff]  }
  0xe5   :  { %2425 = vmatprep.subr.bf16.mxu0 %v4265_v50  ;;  %v387_v27 = vmul.f32 %v4895_v59, %v5780_v32  ;;  %v454_v22 = vadd.f32 %v390_v6, %v222_v41  ;;  %v395_v16 = vmul.f32 %v4895_v59, %v5781_v40  ;;  %v221_v50 = vmul.f32 %v4898_v2, %v5777_v18  ;;  %v5784_v6 = vld [vmem:[#allocation27_spill] sm:$0xff] }
  0xe6   :  { %v5226_v63 = vpack.c.bf16 %v615_v48, %v607_v53  ;;  %v229_v34 = vmul.f32 %v4898_v2, %v5779_v21  ;;  %v389_v49 = vmul.f32 %v4901_v4, %v5780_v32  ;;  %v622_v42 = vmax.f32 %v5217_v31, 0.0  ;;  %v4275_v32 = vld [vmem:[#allocation2 + $0x520] ss:$16 sps:$4 sm:$0xff]   ;;  %v5785_v53 = vld [vmem:[#allocation31_spill] sm:$0xff] }
  0xe7   :  { %2497 = vmatpush2.bf16.msra.mxu1 %v4260_v9  ;;  %v451_v17 = vadd.f32 %v387_v27, %v219_v43  ;;  %v630_v52 = vmax.f32 %v5220_v1, 0.0  ;;  %v462_v46 = vadd.f32 %v398_v44, %v230_v29  ;;  %v459_v51 = vadd.f32 %v395_v16, %v227_v37  ;;  %v4283_v29 = vld [vmem:[#allocation2 + $0x504] ss:$16 sps:$4 sm:$0xff]   ;;  %v4293_v31 = vld [vmem:[#allocation2 + $0xc8] ss:$16 sps:$4 sm:$0xff]  }
  0xe8   :  { %2498 = vmatprep.subr.bf16.mxu1 %v4268_v24  ;;  %2426 = vmatpush2.bf16.msra.mxu0 %v4263_v30  ;;  %v397_v9 = vmul.f32 %v4901_v4, %v5781_v40  ;;  %v453_v18 = vadd.f32 %v389_v49, %v221_v50  ;;  %v5783_v24 = vld [vmem:[#allocation28_spill] sm:$0xff]  ;;  %v5248_v30 = vadd.f32 %v4873_v56, %v454_v22 }
  0xe9   :  { %2427 = vmatprep.subr.bf16.mxu0 %v4271_v19  ;;  %v557_v14 = vadd.f32 %v5776_v23, %v451_v17  ;;  %v236_v21 = vmul.f32 %v5778_v7, %v5783_v24  ;;  %v565_v41 = vadd.f32 %v5776_v23, %v459_v51  ;;  %v244_v19 = vmul.f32 %v5778_v7, %v5784_v6  ;;  %v4280_v40 = vld [vmem:[#allocation2 + $0x724] ss:$16 sps:$4 sm:$0xff]   ;;  %v4278_v51 = vld [vmem:[#allocation2 + $0x720] ss:$16 sps:$4 sm:$0xff]  }
  0xea   :  { %v404_v48 = vmul.f32 %v4879_v58, %v5785_v53  ;;  %v461_v43 = vadd.f32 %v397_v9, %v229_v34  ;;  %v559_v37 = vadd.f32 %v5782_v3, %v453_v18  ;;  %v412_v27 = vmul.f32 %v4879_v58, %v5064_v25  ;;  %v4286_v18 = vld [vmem:[#allocation2 + $0x704] ss:$16 sps:$4 sm:$0xff]  }
  0xeb   :  { %2499 = vmatpush2.bf16.msra.mxu1 %v4266_v38  ;;  %v621_v44 = vmax.f32 %v557_v14, 0.0  ;;  %v5259_v38 = vadd.f32 %v4873_v56, %v462_v46  ;;  %v629_v22 = vmax.f32 %v565_v41, 0.0  ;;  %v238_v17 = vmul.f32 %v4882_v60, %v5783_v24  ;;  %v4281_v14 = vld [vmem:[#allocation2 + $0x500] ss:$16 sps:$4 sm:$0xff]  }
  0xec   :  { %2500 = vmatprep.subr.bf16.mxu1 %v4274_v62  ;;  %2428 = vmatpush2.bf16.msra.mxu0 %v4269_v12  ;;  %v468_v16 = vadd.f32 %v404_v48, %v236_v21  ;;  %v567_v62 = vadd.f32 %v5782_v3, %v461_v43  ;;  %v623_v50 = vmax.f32 %v559_v37, 0.0  ;;  %v476_v49 = vadd.f32 %v412_v27, %v244_v19  ;;  %v4284_v48 = vld [vmem:[#allocation2 + $0x700] ss:$16 sps:$4 sm:$0xff]  }
  0xed   :  { %2429 = vmatprep.subr.bf16.mxu0 %v4277_v10  ;;  %v246_v34 = vmul.f32 %v4882_v60, %v5784_v6  ;;  %v5266_v12 = vpack.c.bf16 %v629_v22, %v621_v44  ;;  %v406_v9 = vmul.f32 %v4885_v61, %v5785_v53  ;;  %v414_v10 = vmul.f32 %v4885_v61, %v5064_v25  ;;  %v4289_v44 = vld [vmem:[#allocation2 + $0xec] ss:$16 sps:$4 sm:$0xff]  }
  0xee   :  { %v5269_v46 = vadd.f32 %v4870_v55, %v468_v16  ;;  %v624_v21 = vmax.f32 %v5248_v30, 0.0  ;;  %v631_v41 = vmax.f32 %v567_v62, 0.0  ;;  %v243_v19 = vmul.f32 %v4892_v0, %v5784_v6  ;;  %v4287_v62 = vld [vmem:[#allocation2 + $0xe8] ss:$16 sps:$4 sm:$0xff]  }
  0xef   :  { %2501 = vmatpush2.bf16.msra.mxu1 %v4272_v26  ;;  %v235_v26 = vmul.f32 %v4892_v0, %v5783_v24  ;;  %v5281_v43 = vadd.f32 %v4870_v55, %v476_v49  ;;  %v470_v37 = vadd.f32 %v406_v9, %v238_v17  ;;  %v478_v27 = vadd.f32 %v414_v10, %v246_v34  ;;  %v4292_v49 = vld [vmem:[#allocation2 + $0x2ec] ss:$16 sps:$4 sm:$0xff]  }
  0xf0   :  { %2502 = vmatprep.subr.bf16.mxu1 %v4280_v40  ;;  %2430 = vmatpush2.bf16.msra.mxu0 %v4275_v32  ;;  %v403_v40 = vmul.f32 %v4895_v59, %v5785_v53  ;;  %v632_v30 = vmax.f32 %v5259_v38, 0.0  ;;  %v5286_v22 = vpack.c.bf16 %v631_v41, %v623_v50  ;;  %v411_v16 = vmul.f32 %v4895_v59, %v5064_v25  ;;  %v4295_v38 = vld [vmem:[#allocation2 + $0xcc] ss:$16 sps:$4 sm:$0xff]   ;;  %v4290_v41 = vld [vmem:[#allocation2 + $0x2e8] ss:$16 sps:$4 sm:$0xff]  }
  0xf1   :  { %2431 = vmatprep.subr.bf16.mxu0 %v4283_v29  ;;  %v237_v32 = vmul.f32 %v4898_v2, %v5783_v24  ;;  %v638_v17 = vmax.f32 %v5269_v46, 0.0  ;;  %v5294_v34 = vadd.f32 %v4873_v56, %v470_v37  ;;  %v245_v29 = vmul.f32 %v4898_v2, %v5784_v6  ;;  %v4298_v37 = vld [vmem:[#allocation2 + $0x2cc] ss:$16 sps:$4 sm:$0xff]  }
  0xf2   :  { %v467_v9 = vadd.f32 %v403_v40, %v235_v26  ;;  %v5299_v50 = vadd.f32 %v4873_v56, %v478_v27  ;;  %v475_v10 = vadd.f32 %v411_v16, %v243_v19  ;;  %v405_v24 = vmul.f32 %v4901_v4, %v5785_v53 }
  0xf3   :  { %2503 = vmatpush2.bf16.msra.mxu1 %v4278_v51  ;;  %v413_v51 = vmul.f32 %v4901_v4, %v5064_v25  ;;  %v5309_v26 = vpack.c.bf16 %v630_v52, %v622_v42  ;;  %v646_v6 = vmax.f32 %v5281_v43, 0.0  ;;  %v260_v42 = vmul.f32 %v5778_v7, %v5086_v11  ;;  %v4301_v43 = vld [vmem:[#allocation2 + $0xac] ss:$16 sps:$4 sm:$0xff]  }
  0xf4   :  { %2504 = vmatprep.subr.bf16.mxu1 %v4286_v18  ;;  %2432 = vmatpush2.bf16.msra.mxu0 %v4281_v14  ;;  %v640_v18 = vmax.f32 %v5294_v34, 0.0  ;;  %v573_v19 = vadd.f32 %v5776_v23, %v467_v9  ;;  %v581_v53 = vadd.f32 %v5776_v23, %v475_v10  ;;  %v469_v27 = vadd.f32 %v405_v24, %v237_v32  ;;  %v4296_v34 = vld [vmem:[#allocation2 + $0x2c8] ss:$16 sps:$4 sm:$0xff]   ;;  %v4304_v9 = vld [vmem:[#allocation2 + $0x2ac] ss:$16 sps:$4 sm:$0xff]  }
  0xf5   :  { %2547 = vmatprep.subr.bf16.mxu0 %v4289_v44  ;;  %v477_v25 = vadd.f32 %v413_v51, %v245_v29  ;;  %v252_v14 = vmul.f32 %v5778_v7, %v5043_v5  ;;  %v420_v52 = vmul.f32 %v4879_v58, %v5079_v35  ;;  %v428_v44 = vmul.f32 %v4879_v58, %v5110_v39 }
  0xf6   :  { %v637_v1 = vmax.f32 %v573_v19, 0.0  ;;  %v648_v40 = vmax.f32 %v5299_v50, 0.0  ;;  %v645_v16 = vmax.f32 %v581_v53, 0.0  ;;  %v5328_v7 = vpack.c.bf16 %v632_v30, %v624_v21  ;;  %v4299_v30 = vld [vmem:[#allocation2 + $0xa8] ss:$16 sps:$4 sm:$0xff]  }
  0xf7   :  { %2505 = vmatpush2.bf16.msra.mxu1 %v4284_v48  ;;  %2434 = vmatmul.mubr.bf16.vlgmr.msra.gmra.mxu0 %v5212_v57  ;;  %v575_v48 = vadd.f32 %v5782_v3, %v469_v27  ;;  %v583_v32 = vadd.f32 %v5782_v3, %v477_v25  ;;  %v254_v58 = vmul.f32 %v4882_v60, %v5043_v5 }
  0xf8   :  { %2620 = vmatprep.subr.bf16.mxu1 %v4292_v49  ;;  %2443 = vmatprep.mubr.bf16.mxu0 %v5309_v26  ;;  %v262_v49 = vmul.f32 %v4882_v60, %v5086_v11  ;;  %v5335_v29 = vpack.c.bf16 %v645_v16, %v637_v1  ;;  %v422_v21 = vmul.f32 %v4885_v61, %v5079_v35  ;;  %v4316_v16 = vld [vmem:[#allocation2 + $0x26c] ss:$16 sps:$4 sm:$0xff]  }
  0xf9   :  { %2548 = vmatpush1.bf16.msra.mxu0 %v4287_v62  ;;  %v639_v50 = vmax.f32 %v575_v48, 0.0  ;;  %v647_v10 = vmax.f32 %v583_v32, 0.0  ;;  %v484_v62 = vadd.f32 %v420_v52, %v252_v14  ;;  %v492_v24 = vadd.f32 %v428_v44, %v260_v42  ;;  %v4311_v48 = vld [vmem:[#allocation2 + $0x68] ss:$16 sps:$4 sm:$0xff]  }
  0xfa   :  { %2507 = vmatmul.mubr.bf16.vlgmr.msra.gmra.mxu1 %v5226_v63  ;;  %2549 = vmatprep.subr.bf16.mxu0 %v4295_v38  ;;  %v430_v60 = vmul.f32 %v4885_v61, %v5110_v39  ;;  %v4307_v38 = vld [vmem:[#allocation2 + $0x8c] ss:$16 sps:$4 sm:$0xff]   ;;  %v486_v19 = vadd.f32 %v422_v21, %v254_v58  ;;  %v251_v27 = vmul.f32 %v4892_v0, %v5043_v5  ;;  %v4314_v21 = vld [vmem:[#allocation2 + $0x268] ss:$16 sps:$4 sm:$0xff]  }
  0xfb   :  { %2516 = vmatprep.mubr.bf16.mxu1 %v5328_v7  ;;  %2621 = vmatpush1.bf16.msra.mxu1 %v4290_v41  ;;  %v5342_v51 = vpack.c.bf16 %v647_v10, %v639_v50  ;;  %v259_v25 = vmul.f32 %v4892_v0, %v5086_v11  ;;  %v419_v41 = vmul.f32 %v4895_v59, %v5079_v35 }
  0xfc   :  { %2622 = vmatprep.subr.bf16.mxu1 %v4298_v37  ;;  %v494_v53 = vadd.f32 %v430_v60, %v262_v49  ;;  %v427_v61 = vmul.f32 %v4895_v59, %v5110_v39  ;;  %v253_v37 = vmul.f32 %v4898_v2, %v5043_v5  ;;  %v261_v14 = vmul.f32 %v4898_v2, %v5086_v11  ;;  %v4310_v5 = vld [vmem:[#allocation2 + $0x28c] ss:$16 sps:$4 sm:$0xff]   ;;  %v4305_v11 = vld [vmem:[#allocation2 + $0x88] ss:$16 sps:$4 sm:$0xff]  }
  0xfd   :  { %2550 = vmatpush1.bf16.msra.mxu0 %v4293_v31  ;;  %v4302_v31 = vld [vmem:[#allocation2 + $0x2a8] ss:$16 sps:$4 sm:$0xff]   ;;  %v5358_v1 = vpack.c.bf16 %v646_v6, %v638_v17  ;;  %v590_v0 = vadd.f32 %v4870_v55, %v484_v62  ;;  %v598_v42 = vadd.f32 %v4870_v55, %v492_v24  ;;  %v421_v52 = vmul.f32 %v4901_v4, %v5079_v35  ;;  %v4313_v35 = vld [vmem:[#allocation2 + $0x6c] ss:$16 sps:$4 sm:$0xff]  }
  0xfe   :  { %2551 = vmatprep.subr.bf16.mxu0 %v4301_v43  ;;  %v5365_v59 = vpack.c.bf16 %v648_v40, %v640_v18  ;;  %v429_v2 = vmul.f32 %v4901_v4, %v5110_v39  ;;  %v592_v46 = vadd.f32 %v4873_v56, %v486_v19  ;;  %v600_v55 = vadd.f32 %v4873_v56, %v494_v53  ;;  %v4308_v4 = vld [vmem:[#allocation2 + $0x288] ss:$16 sps:$4 sm:$0xff]   ;;  %v4319_v49 = vld [vmem:[#allocation2 + $0x4c] ss:$16 sps:$4 sm:$0xff]  }
  0xff   :  { %2623 = vmatpush1.bf16.msra.mxu1 %v4296_v34  ;;  %2444 = vmatmul.mubr.bf16.gmra.mxu0 %v5266_v12  ;;  %v485_v17 = vadd.f32 %v421_v52, %v253_v37  ;;  %v483_v6 = vadd.f32 %v419_v41, %v251_v27  ;;  %v491_v18 = vadd.f32 %v427_v61, %v259_v25  ;;  %v654_v39 = vmax.f32 %v590_v0, 0.0  ;;  %v4317_v60 = vld [vmem:[#allocation2 + $0x48] ss:$16 sps:$4 sm:$0xff]   ;;  %v4325_v19 = vld [vmem:[#allocation2 + $0x2c] ss:$16 sps:$4 sm:$0xff]   ;;  %v5787_v52 = vld [vmem:[#allocation22_spill] sm:$0xff] }
 0x100   :  { %2624 = vmatprep.subr.bf16.mxu1 %v4304_v9  ;;  %2453 = vmatprep.mubr.bf16.mxu0 %v5358_v1  ;;  %v493_v44 = vadd.f32 %v429_v2, %v261_v14  ;;  %v662_v43 = vmax.f32 %v598_v42, 0.0  ;;  %v656_v32 = vmax.f32 %v592_v46, 0.0  ;;  %v664_v34 = vmax.f32 %v600_v55, 0.0  ;;  %v4320_v53 = vld [vmem:[#allocation2 + $0x248] ss:$16 sps:$4 sm:$0xff]  }
 0x101   :  { %2552 = vmatpush1.bf16.msra.mxu0 %v4299_v30  ;;  %v591_v40 = vadd.f32 %v5782_v3, %v485_v17  ;;  %v589_v9 = vadd.f32 %v5776_v23, %v483_v6  ;;  %v597_v50 = vadd.f32 %v5776_v23, %v491_v18  ;;  %v4328_v27 = vld [vmem:[#allocation2 + $0x22c] ss:$16 sps:$4 sm:$0xff]   ;;  %v4323_v25 = vld [vmem:[#allocation2 + $0x28] ss:$16 sps:$4 sm:$0xff]  }
 0x102   :  { %2517 = vmatmul.mubr.bf16.gmra.mxu1 %v5286_v22  ;;  %2553 = vmatprep.subr.bf16.mxu0 %v4307_v38  ;;  %v599_v56 = vadd.f32 %v5782_v3, %v493_v44  ;;  %v5378_v30 = vpack.c.bf16 %v662_v43, %v654_v39  ;;  %v4322_v3 = vld [vmem:[#allocation2 + $0x24c] ss:$16 sps:$4 sm:$0xff]   ;;  %v5384_v24 = vpack.c.bf16 %v664_v34, %v656_v32  ;;  %v4326_v37 = vld [vmem:[#allocation2 + $0x228] ss:$16 sps:$4 sm:$0xff]  }
 0x103   :  { %2526 = vmatprep.mubr.bf16.mxu1 %v5365_v59  ;;  %2625 = vmatpush1.bf16.msra.mxu1 %v4302_v31  ;;  %v655_v58 = vmax.f32 %v591_v40, 0.0  ;;  %v653_v23 = vmax.f32 %v589_v9, 0.0  ;;  %v661_v38 = vmax.f32 %v597_v50, 0.0  ;;  %v4331_v61 = vld [vmem:[#allocation2 + $0xc] ss:$16 sps:$4 sm:$0xff]  }
 0x104   :  { %2626 = vmatprep.subr.bf16.mxu1 %v4310_v5  ;;  %v663_v10 = vmax.f32 %v599_v56, 0.0  ;;  %v4334_v14 = vld [vmem:[#allocation2 + $0x20c] ss:$16 sps:$4 sm:$0xff]   ;;  %v4329_v0 = vld [vmem:[#allocation2 + $0x8] ss:$16 sps:$4 sm:$0xff]  }
 0x105   :  { %2554 = vmatpush1.bf16.msra.mxu0 %v4305_v11  ;;  %v5388_v41 = vpack.c.bf16 %v661_v38, %v653_v23  ;;  %v5786_v31 = vld [vmem:[#allocation21_spill] sm:$0xff] }
 0x106   :  { %2555 = vmatprep.subr.bf16.mxu0 %v4313_v35  ;;  %v5381_v62 = vpack.c.bf16 %v663_v10, %v655_v58  ;;  %v4337_v42 = vld [vmem:[#allocation2 + $0x1ec] ss:$16 sps:$4 sm:$0xff]   ;;  %v4332_v5 = vld [vmem:[#allocation2 + $0x208] ss:$16 sps:$4 sm:$0xff]  }
 0x107   :  { %2627 = vmatpush1.bf16.msra.mxu1 %v4308_v4  ;;  %2454 = vmatmul.mubr.bf16.gmra.mxu0 %v5335_v29  ;;  %v4340_v2 = vld [vmem:[#allocation2 + $0x3ec] ss:$16 sps:$4 sm:$0xff]   ;;  %v4335_v11 = vld [vmem:[#allocation2 + $0x1e8] ss:$16 sps:$4 sm:$0xff]  }
 0x108   :  { %2628 = vmatprep.subr.bf16.mxu1 %v4316_v16  ;;  %2463 = vmatprep.mubr.bf16.mxu0 %v5378_v30  ;;  %v4343_v46 = vld [vmem:[#allocation2 + $0x1cc] ss:$16 sps:$4 sm:$0xff]   ;;  %v4338_v55 = vld [vmem:[#allocation2 + $0x3e8] ss:$16 sps:$4 sm:$0xff]  }
 0x109   :  { %2556 = vmatpush1.bf16.msra.mxu0 %v4311_v48  ;;  %v4346_v17 = vld [vmem:[#allocation2 + $0x3cc] ss:$16 sps:$4 sm:$0xff]   ;;  %v4341_v35 = vld [vmem:[#allocation2 + $0x1c8] ss:$16 sps:$4 sm:$0xff]  }
 0x10a   :  { %2527 = vmatmul.mubr.bf16.gmra.mxu1 %v5342_v51  ;;  %2557 = vmatprep.subr.bf16.mxu0 %v4319_v49  ;;  %v4349_v6 = vld [vmem:[#allocation2 + $0x1ac] ss:$16 sps:$4 sm:$0xff]   ;;  %v4344_v18 = vld [vmem:[#allocation2 + $0x3c8] ss:$16 sps:$4 sm:$0xff]  }
 0x10b   :  { %2536 = vmatprep.mubr.bf16.mxu1 %v5384_v24  ;;  %2629 = vmatpush1.bf16.msra.mxu1 %v4314_v21  ;;  %v4352_v44 = vld [vmem:[#allocation2 + $0x3ac] ss:$16 sps:$4 sm:$0xff]   ;;  %v4347_v4 = vld [vmem:[#allocation2 + $0x1a8] ss:$16 sps:$4 sm:$0xff]  }
 0x10c   :  { %2630 = vmatprep.subr.bf16.mxu1 %v4322_v3  ;;  %v4355_v39 = vld [vmem:[#allocation2 + $0x18c] ss:$16 sps:$4 sm:$0xff]   ;;  %v4350_v43 = vld [vmem:[#allocation2 + $0x3a8] ss:$16 sps:$4 sm:$0xff]  }
 0x10d   :  { %2558 = vmatpush1.bf16.msra.mxu0 %v4317_v60  ;;  %v4358_v40 = vld [vmem:[#allocation2 + $0x38c] ss:$16 sps:$4 sm:$0xff]   ;;  %v4353_v16 = vld [vmem:[#allocation2 + $0x188] ss:$16 sps:$4 sm:$0xff]  }
 0x10e   :  { %2559 = vmatprep.subr.bf16.mxu0 %v4325_v19  ;;  %v4361_v56 = vld [vmem:[#allocation2 + $0x16c] ss:$16 sps:$4 sm:$0xff]   ;;  %v4356_v48 = vld [vmem:[#allocation2 + $0x388] ss:$16 sps:$4 sm:$0xff]  }
 0x10f   :  { %2631 = vmatpush1.bf16.msra.mxu1 %v4320_v53  ;;  %2464 = vmatmul.mubr.bf16.gmra.mxu0 %v5388_v41  ;;  %v4364_v32 = vld [vmem:[#allocation2 + $0x36c] ss:$16 sps:$4 sm:$0xff]   ;;  %v4359_v34 = vld [vmem:[#allocation2 + $0x168] ss:$16 sps:$4 sm:$0xff]  }
 0x110   :  { %2632 = vmatprep.subr.bf16.mxu1 %v4328_v27  ;;  %2579 = vmatprep.mubr.bf16.mxu0 %v5786_v31  ;;  %v4367_v58 = vld [vmem:[#allocation2 + $0x14c] ss:$16 sps:$4 sm:$0xff]   ;;  %v4362_v49 = vld [vmem:[#allocation2 + $0x368] ss:$16 sps:$4 sm:$0xff]  }
 0x111   :  { %2560 = vmatpush1.bf16.msra.mxu0 %v4323_v25  ;;  %v4370_v9 = vld [vmem:[#allocation2 + $0x34c] ss:$16 sps:$4 sm:$0xff]   ;;  %v4365_v50 = vld [vmem:[#allocation2 + $0x148] ss:$16 sps:$4 sm:$0xff]  }
 0x112   :  { %2537 = vmatmul.mubr.bf16.gmra.mxu1 %v5381_v62  ;;  %2561 = vmatprep.subr.bf16.mxu0 %v4331_v61  ;;  %v4373_v10 = vld [vmem:[#allocation2 + $0x12c] ss:$16 sps:$4 sm:$0xff]   ;;  %v4368_v21 = vld [vmem:[#allocation2 + $0x348] ss:$16 sps:$4 sm:$0xff]  }
 0x113   :  { %2633 = vmatpush1.bf16.msra.mxu1 %v4326_v37  ;;  %2652 = vmatprep.mubr.bf16.mxu1 %v5787_v52  ;;  %v4376_v3 = vld [vmem:[#allocation2 + $0x32c] ss:$16 sps:$4 sm:$0xff]   ;;  %v4371_v60 = vld [vmem:[#allocation2 + $0x128] ss:$16 sps:$4 sm:$0xff]  }
 0x114   :  { %2634 = vmatprep.subr.bf16.mxu1 %v4334_v14  ;;  %v4379_v23 = vld [vmem:[#allocation2 + $0x10c] ss:$16 sps:$4 sm:$0xff]   ;;  %v4374_v38 = vld [vmem:[#allocation2 + $0x328] ss:$16 sps:$4 sm:$0xff]  }
 0x115   :  { %2562 = vmatpush1.bf16.msra.mxu0 %v4329_v0  ;;  %v4382_v19 = vld [vmem:[#allocation2 + $0x30c] ss:$16 sps:$4 sm:$0xff]   ;;  %v4377_v53 = vld [vmem:[#allocation2 + $0x108] ss:$16 sps:$4 sm:$0xff]  }
 0x116   :  { %2563 = vmatprep.subr.bf16.mxu0 %v4337_v42  ;;  %v4385_v27 = vld [vmem:[#allocation2 + $0x4ec] ss:$16 sps:$4 sm:$0xff]   ;;  %v4380_v25 = vld [vmem:[#allocation2 + $0x308] ss:$16 sps:$4 sm:$0xff]  }
 0x117   :  { %2635 = vmatpush1.bf16.msra.mxu1 %v4332_v5  ;;  %v4388_v61 = vld [vmem:[#allocation2 + $0x6ec] ss:$16 sps:$4 sm:$0xff]   ;;  %v4383_v37 = vld [vmem:[#allocation2 + $0x4e8] ss:$16 sps:$4 sm:$0xff]  }
 0x118   :  { %2636 = vmatprep.subr.bf16.mxu1 %v4340_v2  ;;  %v4391_v14 = vld [vmem:[#allocation2 + $0x4cc] ss:$16 sps:$4 sm:$0xff]   ;;  %v4386_v31 = vld [vmem:[#allocation2 + $0x6e8] ss:$16 sps:$4 sm:$0xff]   ;;  %v5790_v2 = vld [vmem:[#allocation26_spill] sm:$0xff] }
 0x119   :  { %2564 = vmatpush2.bf16.msra.mxu0 %v4335_v11  ;;  %v5788_v0 = vld [vmem:[#allocation23_spill] sm:$0xff]  ;;  %v5789_v52 = vld [vmem:[#allocation29_spill] sm:$0xff] }
 0x11a   :  { %2565 = vmatprep.subr.bf16.mxu0 %v4343_v46  ;;  %v4394_v42 = vld [vmem:[#allocation2 + $0x6cc] ss:$16 sps:$4 sm:$0xff]   ;;  %v4389_v5 = vld [vmem:[#allocation2 + $0x4c8] ss:$16 sps:$4 sm:$0xff]   ;;  %v5791_v46 = vld [vmem:[#allocation30_spill] sm:$0xff] }
 0x11b   :  { %2637 = vmatpush2.bf16.msra.mxu1 %v4338_v55  ;;  %v4397_v11 = vld [vmem:[#allocation2 + $0x4ac] ss:$16 sps:$4 sm:$0xff]   ;;  %v4392_v55 = vld [vmem:[#allocation2 + $0x6c8] ss:$16 sps:$4 sm:$0xff]  }
 0x11c   :  { %2638 = vmatprep.subr.bf16.mxu1 %v4346_v17  ;;  %v4400_v17 = vld [vmem:[#allocation2 + $0x6ac] ss:$16 sps:$4 sm:$0xff]  }
 0x11d   :  { %2566 = vmatpush2.bf16.msra.mxu0 %v4341_v35  ;;  %v4395_v35 = vld [vmem:[#allocation2 + $0x4a8] ss:$16 sps:$4 sm:$0xff]  }
 0x11e   :  { %2567 = vmatprep.subr.bf16.mxu0 %v4349_v6  ;;  %v4403_v6 = vld [vmem:[#allocation2 + $0x48c] ss:$16 sps:$4 sm:$0xff]  }
 0x11f   :  { %2639 = vmatpush2.bf16.msra.mxu1 %v4344_v18  ;;  %v4398_v18 = vld [vmem:[#allocation2 + $0x6a8] ss:$16 sps:$4 sm:$0xff]  }
 0x120   :  { %2640 = vmatprep.subr.bf16.mxu1 %v4352_v44  ;;  %v5792_v44 = vld [vmem:[#allocation32_spill] sm:$0xff] }
 0x121   :  { %2568 = vmatpush2.bf16.msra.mxu0 %v4347_v4  ;;  %v4406_v4 = vld [vmem:[#allocation2 + $0x68c] ss:$16 sps:$4 sm:$0xff]  }
 0x122   :  { %2569 = vmatprep.subr.bf16.mxu0 %v4355_v39  ;;  %v4401_v39 = vld [vmem:[#allocation2 + $0x488] ss:$16 sps:$4 sm:$0xff]  }
 0x123   :  { %2641 = vmatpush2.bf16.msra.mxu1 %v4350_v43  ;;  %v5793_v43 = vld [vmem:[#allocation33_spill] sm:$0xff] }
 0x124   :  { %2642 = vmatprep.subr.bf16.mxu1 %v4358_v40  ;;  %v4409_v40 = vld [vmem:[#allocation2 + $0x46c] ss:$16 sps:$4 sm:$0xff]  }
 0x125   :  { %2570 = vmatpush2.bf16.msra.mxu0 %v4353_v16  ;;  %v4404_v16 = vld [vmem:[#allocation2 + $0x688] ss:$16 sps:$4 sm:$0xff]  }
 0x126   :  { %2571 = vmatprep.subr.bf16.mxu0 %v4361_v56  ;;  %v4412_v56 = vld [vmem:[#allocation2 + $0x66c] ss:$16 sps:$4 sm:$0xff]  }
 0x127   :  { %2643 = vmatpush2.bf16.msra.mxu1 %v4356_v48  ;;  %v4407_v48 = vld [vmem:[#allocation2 + $0x468] ss:$16 sps:$4 sm:$0xff]  }
 0x128   :  { %2644 = vmatprep.subr.bf16.mxu1 %v4364_v32  ;;  %v4415_v32 = vld [vmem:[#allocation2 + $0x44c] ss:$16 sps:$4 sm:$0xff]  }
 0x129   :  { %2572 = vmatpush2.bf16.msra.mxu0 %v4359_v34  ;;  %v4410_v34 = vld [vmem:[#allocation2 + $0x668] ss:$16 sps:$4 sm:$0xff]  }
 0x12a   :  { %2573 = vmatprep.subr.bf16.mxu0 %v4367_v58  ;;  %v4413_v58 = vld [vmem:[#allocation2 + $0x448] ss:$16 sps:$4 sm:$0xff]  }
 0x12b   :  { %2645 = vmatpush2.bf16.msra.mxu1 %v4362_v49  ;;  %v4416_v49 = vld [vmem:[#allocation2 + $0x648] ss:$16 sps:$4 sm:$0xff]  }
 0x12c   :  { %2646 = vmatprep.subr.bf16.mxu1 %v4370_v9  ;;  %v4424_v9 = vld [vmem:[#allocation2 + $0x62c] ss:$16 sps:$4 sm:$0xff]  }
 0x12d   :  { %2574 = vmatpush2.bf16.msra.mxu0 %v4365_v50  ;;  %v4419_v50 = vld [vmem:[#allocation2 + $0x428] ss:$16 sps:$4 sm:$0xff]  }
 0x12e   :  { %2575 = vmatprep.subr.bf16.mxu0 %v4373_v10  ;;  %v4422_v10 = vld [vmem:[#allocation2 + $0x628] ss:$16 sps:$4 sm:$0xff]  }
 0x12f   :  { %2647 = vmatpush2.bf16.msra.mxu1 %v4368_v21  ;;  %v4428_v21 = vld [vmem:[#allocation2 + $0x608] ss:$16 sps:$4 sm:$0xff]  }
 0x130   :  { %2648 = vmatprep.subr.bf16.mxu1 %v4376_v3  ;;  %v4436_v3 = vld [vmem:[#allocation2 + $0x7ec] ss:$16 sps:$4 sm:$0xff]  }
 0x131   :  { %2576 = vmatpush2.bf16.msra.mxu0 %v4371_v60  ;;  %v4431_v60 = vld [vmem:[#allocation2 + $0x5e8] ss:$16 sps:$4 sm:$0xff]  }
 0x132   :  { %2577 = vmatprep.subr.bf16.mxu0 %v4379_v23  ;;  %v4434_v23 = vld [vmem:[#allocation2 + $0x7e8] ss:$16 sps:$4 sm:$0xff]  }
 0x133   :  { %2649 = vmatpush2.bf16.msra.mxu1 %v4374_v38  ;;  %v4442_v38 = vld [vmem:[#allocation2 + $0x7cc] ss:$16 sps:$4 sm:$0xff]  }
 0x134   :  { %2650 = vmatprep.subr.bf16.mxu1 %v4382_v19  ;;  %v4440_v19 = vld [vmem:[#allocation2 + $0x7c8] ss:$16 sps:$4 sm:$0xff]  }
 0x135   :  { %2578 = vmatpush2.bf16.msra.mxu0 %v4377_v53  ;;  %v4448_v53 = vld [vmem:[#allocation2 + $0x7ac] ss:$16 sps:$4 sm:$0xff]  }
 0x136   :  { %2693 = vmatprep.subr.bf16.mxu0 %v4385_v27  ;;  %v4451_v27 = vld [vmem:[#allocation2 + $0x58c] ss:$16 sps:$4 sm:$0xff]  }
 0x137   :  { %2651 = vmatpush2.bf16.msra.mxu1 %v4380_v25  ;;  %v4446_v25 = vld [vmem:[#allocation2 + $0x7a8] ss:$16 sps:$4 sm:$0xff]  }
 0x138   :  { %2580 = vmatmul.mubr.bf16.vlgmr.msra.gmra.mxu0 %v5788_v0  ;;  %2766 = vmatprep.subr.bf16.mxu1 %v4388_v61  ;;  %v4454_v61 = vld [vmem:[#allocation2 + $0x78c] ss:$16 sps:$4 sm:$0xff]  }
 0x139   :  { %2589 = vmatprep.mubr.bf16.mxu0 %v5789_v52  ;;  %2694 = vmatpush1.bf16.msra.mxu0 %v4383_v37  ;;  %v4449_v37 = vld [vmem:[#allocation2 + $0x588] ss:$16 sps:$4 sm:$0xff]   ;;  %v4460_v0 = vld [vmem:[#allocation2 + $0x76c] ss:$16 sps:$4 sm:$0xff]  }
 0x13a   :  { %2653 = vmatmul.mubr.bf16.vlgmr.msra.gmra.mxu1 %v5790_v2  ;;  %2695 = vmatprep.subr.bf16.mxu0 %v4391_v14  ;;  %v4457_v14 = vld [vmem:[#allocation2 + $0x56c] ss:$16 sps:$4 sm:$0xff]  }
 0x13b   :  { %2662 = vmatprep.mubr.bf16.mxu1 %v5791_v46  ;;  %2767 = vmatpush1.bf16.msra.mxu1 %v4386_v31  ;;  %v4452_v31 = vld [vmem:[#allocation2 + $0x788] ss:$16 sps:$4 sm:$0xff]   ;;  %v4463_v52 = vld [vmem:[#allocation2 + $0x54c] ss:$16 sps:$4 sm:$0xff]  }
 0x13c   :  { %2768 = vmatprep.subr.bf16.mxu1 %v4394_v42  ;;  %v4455_v42 = vld [vmem:[#allocation2 + $0x568] ss:$16 sps:$4 sm:$0xff]   ;;  %v4466_v2 = vld [vmem:[#allocation2 + $0x74c] ss:$16 sps:$4 sm:$0xff]  }
 0x13d   :  { %2696 = vmatpush1.bf16.msra.mxu0 %v4389_v5  ;;  %v4458_v5 = vld [vmem:[#allocation2 + $0x768] ss:$16 sps:$4 sm:$0xff]   ;;  %v4469_v46 = vld [vmem:[#allocation2 + $0x52c] ss:$16 sps:$4 sm:$0xff]  }
 0x13e   :  { %2697 = vmatprep.subr.bf16.mxu0 %v4397_v11  ;;  %v4461_v11 = vld [vmem:[#allocation2 + $0x548] ss:$16 sps:$4 sm:$0xff]  }
 0x13f   :  { %2769 = vmatpush1.bf16.msra.mxu1 %v4392_v55  ;;  %v4464_v55 = vld [vmem:[#allocation2 + $0x748] ss:$16 sps:$4 sm:$0xff]  }
 0x140   :  { %2590 = vmatmul.mubr.bf16.gmra.mxu0 %v5792_v44  ;;  %2770 = vmatprep.subr.bf16.mxu1 %v4400_v17  ;;  %v4472_v17 = vld [vmem:[#allocation2 + $0x72c] ss:$16 sps:$4 sm:$0xff]  }
 0x141   :  { %2599 = vmatprep.mubr.bf16.mxu0 %v5103_v33  ;;  %2698 = vmatpush1.bf16.msra.mxu0 %v4395_v35  ;;  %v4418_v33 = vld [vmem:[#allocation2 + $0x64c] ss:$16 sps:$4 sm:$0xff]   ;;  %v4467_v35 = vld [vmem:[#allocation2 + $0x528] ss:$16 sps:$4 sm:$0xff]  }
 0x142   :  { %2663 = vmatmul.mubr.bf16.gmra.mxu1 %v5793_v43  ;;  %2699 = vmatprep.subr.bf16.mxu0 %v4403_v6  ;;  %v4475_v6 = vld [vmem:[#allocation2 + $0x50c] ss:$16 sps:$4 sm:$0xff]   ;;  %v4476_v43 = vld [vmem:[#allocation2 + $0x708] ss:$16 sps:$4 sm:$0xff]  }
 0x143   :  { %2672 = vmatprep.mubr.bf16.mxu1 %v5105_v13  ;;  %2771 = vmatpush1.bf16.msra.mxu1 %v4398_v18  ;;  %v4421_v13 = vld [vmem:[#allocation2 + $0x42c] ss:$16 sps:$4 sm:$0xff]   ;;  %v4470_v18 = vld [vmem:[#allocation2 + $0x728] ss:$16 sps:$4 sm:$0xff]  }
 0x144   :  { %2772 = vmatprep.subr.bf16.mxu1 %v4406_v4  ;;  %v4478_v44 = vld [vmem:[#allocation2 + $0x70c] ss:$16 sps:$4 sm:$0xff]   ;;  %v4473_v4 = vld [vmem:[#allocation2 + $0x508] ss:$16 sps:$4 sm:$0xff]  }
 0x145   :  { %2700 = vmatpush1.bf16.msra.mxu0 %v4401_v39  ;;  %v4481_v39 = vld [vmem:[#allocation5 + $0x74] ss:$8 sps:$4 sm:$0xff]  }
 0x146   :  { %2701 = vmatprep.subr.bf16.mxu0 %v4409_v40  ;;  %v4479_v40 = vld [vmem:[#allocation5 + $0x70] ss:$8 sps:$4 sm:$0xff]  }
 0x147   :  { %2773 = vmatpush1.bf16.msra.mxu1 %v4404_v16  ;;  %v4484_v16 = vld [vmem:[#allocation5 + $0x64] ss:$8 sps:$4 sm:$0xff]  }
 0x148   :  { %2600 = vmatmul.mubr.bf16.gmra.mxu0 %v5112_v20  ;;  %2774 = vmatprep.subr.bf16.mxu1 %v4412_v56  ;;  %v4427_v20 = vld [vmem:[#allocation2 + $0x40c] ss:$16 sps:$4 sm:$0xff]   ;;  %v4482_v56 = vld [vmem:[#allocation5 + $0x60] ss:$8 sps:$4 sm:$0xff]  }
 0x149   :  { %2609 = vmatprep.mubr.bf16.mxu0 %v5150_v45  ;;  %2702 = vmatpush1.bf16.msra.mxu0 %v4407_v48  ;;  %v4430_v45 = vld [vmem:[#allocation2 + $0x60c] ss:$16 sps:$4 sm:$0xff]  }
 0x14a   :  { %2673 = vmatmul.mubr.bf16.gmra.mxu1 %v5114_v47  ;;  %2703 = vmatprep.subr.bf16.mxu0 %v4415_v32  ;;  %v4425_v47 = vld [vmem:[#allocation2 + $0x408] ss:$16 sps:$4 sm:$0xff]   ;;  %v4487_v48 = vld [vmem:[#allocation5 + $0x54] ss:$8 sps:$4 sm:$0xff]  }
 0x14b   :  { %2682 = vmatprep.mubr.bf16.mxu1 %v5152_v54  ;;  %2775 = vmatpush1.bf16.msra.mxu1 %v4410_v34  ;;  %v4433_v54 = vld [vmem:[#allocation2 + $0x5ec] ss:$16 sps:$4 sm:$0xff]   ;;  %v4485_v34 = vld [vmem:[#allocation5 + $0x50] ss:$8 sps:$4 sm:$0xff]  }
 0x14c   :  { %2776 = vmatprep.subr.bf16.mxu1 %v4418_v33 }
 0x14d   :  { %2704 = vmatpush1.bf16.msra.mxu0 %v4413_v58  ;;  %v4490_v58 = vld [vmem:[#allocation5 + $0x44] ss:$8 sps:$4 sm:$0xff]  }
 0x14e   :  { %2705 = vmatprep.subr.bf16.mxu0 %v4421_v13 }
 0x14f   :  { %2777 = vmatpush1.bf16.msra.mxu1 %v4416_v49  ;;  %v4491_v49 = vld [vmem:[#allocation5 + $0x30] ss:$8 sps:$4 sm:$0xff]  }
 0x150   :  { %2610 = vmatmul.mubr.bf16.gmra.mxu0 %v5156_v15  ;;  %2778 = vmatprep.subr.bf16.mxu1 %v4424_v9  ;;  %v4439_v15 = vld [vmem:[#allocation2 + $0x5cc] ss:$16 sps:$4 sm:$0xff]  }
 0x151   :  { %2706 = vmatpush1.bf16.msra.mxu0 %v4419_v50  ;;  %2725 = vmatprep.mubr.bf16.mxu0 %v5178_v28  ;;  %v4437_v28 = vld [vmem:[#allocation2 + $0x5c8] ss:$16 sps:$4 sm:$0xff]  }
 0x152   :  { %2683 = vmatmul.mubr.bf16.gmra.mxu1 %v5176_v36  ;;  %2707 = vmatprep.subr.bf16.mxu0 %v4427_v20  ;;  %v4445_v36 = vld [vmem:[#allocation2 + $0x5ac] ss:$16 sps:$4 sm:$0xff]  }
 0x153   :  { %2779 = vmatpush1.bf16.msra.mxu1 %v4422_v10  ;;  %2798 = vmatprep.mubr.bf16.mxu1 %v5201_v8  ;;  %v4443_v8 = vld [vmem:[#allocation2 + $0x5a8] ss:$16 sps:$4 sm:$0xff]   ;;  %v4499_v20 = vld [vmem:[#allocation5 + $0x14] ss:$8 sps:$4 sm:$0xff]  }
 0x154   :  { %2780 = vmatprep.subr.bf16.mxu1 %v4430_v45  ;;  %v4527_v10 = vld [vmem:[#allocation5 + $0x170] ss:$8 sps:$4 sm:$0xff]   ;;  %v4529_v45 = vld [vmem:[#allocation5 + $0x174] ss:$8 sps:$4 sm:$0xff]  }
 0x155   :  { %2708 = vmatpush1.bf16.msra.mxu0 %v4425_v47 }
 0x156   :  { %2709 = vmatprep.subr.bf16.mxu0 %v4433_v54  ;;  %v4502_v54 = vld [vmem:[#allocation5 + $0x4] ss:$8 sps:$4 sm:$0xff]  }
 0x157   :  { %2781 = vmatpush1.bf16.msra.mxu1 %v4428_v21  ;;  %v4530_v21 = vld [vmem:[#allocation5 + $0x160] ss:$8 sps:$4 sm:$0xff]  }
 0x158   :  { %2782 = vmatprep.subr.bf16.mxu1 %v4436_v3 }
 0x159   :  { %2710 = vmatpush2.bf16.msra.mxu0 %v4431_v60 }
 0x15a   :  { %2711 = vmatprep.subr.bf16.mxu0 %v4439_v15  ;;  %v4505_v15 = vld [vmem:[#allocation5 + $0xf4] ss:$8 sps:$4 sm:$0xff]  }
 0x15b   :  { %2783 = vmatpush2.bf16.msra.mxu1 %v4434_v23  ;;  %v4533_v23 = vld [vmem:[#allocation5 + $0x150] ss:$8 sps:$4 sm:$0xff]  }
 0x15c   :  { %2784 = vmatprep.subr.bf16.mxu1 %v4442_v38  ;;  %v4535_v38 = vld [vmem:[#allocation5 + $0x154] ss:$8 sps:$4 sm:$0xff]  }
 0x15d   :  { %2712 = vmatpush2.bf16.msra.mxu0 %v4437_v28 }
 0x15e   :  { %2713 = vmatprep.subr.bf16.mxu0 %v4445_v36  ;;  %v4503_v36 = vld [vmem:[#allocation5 + $0xf0] ss:$8 sps:$4 sm:$0xff]  }
 0x15f   :  { %2785 = vmatpush2.bf16.msra.mxu1 %v4440_v19 }
 0x160   :  { %2786 = vmatprep.subr.bf16.mxu1 %v4448_v53  ;;  %v4536_v53 = vld [vmem:[#allocation5 + $0x140] ss:$8 sps:$4 sm:$0xff]  }
 0x161   :  { %2714 = vmatpush2.bf16.msra.mxu0 %v4443_v8  ;;  %v4538_v8 = vld [vmem:[#allocation5 + $0x144] ss:$8 sps:$4 sm:$0xff]  }
 0x162   :  { %2715 = vmatprep.subr.bf16.mxu0 %v4451_v27 }
 0x163   :  { %2787 = vmatpush2.bf16.msra.mxu1 %v4446_v25  ;;  %v4541_v25 = vld [vmem:[#allocation5 + $0x134] ss:$8 sps:$4 sm:$0xff]  }
 0x164   :  { %2788 = vmatprep.subr.bf16.mxu1 %v4454_v61 }
 0x165   :  { %2716 = vmatpush2.bf16.msra.mxu0 %v4449_v37  ;;  %v4511_v37 = vld [vmem:[#allocation5 + $0xd4] ss:$8 sps:$4 sm:$0xff]  }
 0x166   :  { %2717 = vmatprep.subr.bf16.mxu0 %v4457_v14  ;;  %v4539_v14 = vld [vmem:[#allocation5 + $0x130] ss:$8 sps:$4 sm:$0xff]  }
 0x167   :  { %2789 = vmatpush2.bf16.msra.mxu1 %v4452_v31 }
 0x168   :  { %2790 = vmatprep.subr.bf16.mxu1 %v4460_v0  ;;  %v4544_v0 = vld [vmem:[#allocation5 + $0x124] ss:$8 sps:$4 sm:$0xff]  }
 0x169   :  { %2718 = vmatpush2.bf16.msra.mxu0 %v4455_v42  ;;  %v4509_v42 = vld [vmem:[#allocation5 + $0xd0] ss:$8 sps:$4 sm:$0xff]  }
 0x16a   :  { %2719 = vmatprep.subr.bf16.mxu0 %v4463_v52 }
 0x16b   :  { %2791 = vmatpush2.bf16.msra.mxu1 %v4458_v5  ;;  %v4514_v5 = vld [vmem:[#allocation5 + $0xc4] ss:$8 sps:$4 sm:$0xff]  }
 0x16c   :  { %2792 = vmatprep.subr.bf16.mxu1 %v4466_v2  ;;  %v4542_v2 = vld [vmem:[#allocation5 + $0x120] ss:$8 sps:$4 sm:$0xff]  }
 0x16d   :  { %2720 = vmatpush2.bf16.msra.mxu0 %v4461_v11 }
 0x16e   :  { %2721 = vmatprep.subr.bf16.mxu0 %v4469_v46  ;;  %v4547_v46 = vld [vmem:[#allocation5 + $0x114] ss:$8 sps:$4 sm:$0xff]  }
 0x16f   :  { %2793 = vmatpush2.bf16.msra.mxu1 %v4464_v55  ;;  %v4512_v55 = vld [vmem:[#allocation5 + $0xc0] ss:$8 sps:$4 sm:$0xff]  }
 0x170   :  { %2794 = vmatprep.subr.bf16.mxu1 %v4472_v17 }
 0x171   :  { %2722 = vmatpush2.bf16.msra.mxu0 %v4467_v35  ;;  %v4517_v35 = vld [vmem:[#allocation5 + $0xb4] ss:$8 sps:$4 sm:$0xff]  }
 0x172   :  { %2723 = vmatprep.subr.bf16.mxu0 %v4475_v6  ;;  %v4545_v6 = vld [vmem:[#allocation5 + $0x110] ss:$8 sps:$4 sm:$0xff]  }
 0x173   :  { %2795 = vmatpush2.bf16.msra.mxu1 %v4470_v18 }
 0x174   :  { %2796 = vmatprep.subr.bf16.mxu1 %v4478_v44  ;;  %v4550_v44 = vld [vmem:[#allocation5 + $0x104] ss:$8 sps:$4 sm:$0xff]  }
 0x175   :  { %2724 = vmatpush2.bf16.msra.mxu0 %v4473_v4  ;;  %v4515_v4 = vld [vmem:[#allocation5 + $0xb0] ss:$8 sps:$4 sm:$0xff]  }
 0x176   :  { %3283 = vmatprep.subr.bf16.mxu0 %v4481_v39  ;;  %v5414_v32 = vpop.f32.mrf.mxu0 }
 0x177   :  { %2797 = vmatpush2.bf16.msra.mxu1 %v4476_v43  ;;  %v4520_v43 = vld [vmem:[#allocation5 + $0xa4] ss:$8 sps:$4 sm:$0xff]  }
 0x178   :  { %2726 = vmatmul.mubr.bf16.vlgmr.msra.gmra.mxu0 %v5212_v57  ;;  %v5418_v13 = vpop.f32.mrf.mxu0  ;;  %v4488_v57 = vld [vmem:[#allocation5 + $0x40] ss:$8 sps:$4 sm:$0xff]   ;;  %3356 = vmatprep.subr.bf16.mxu1 %v4529_v45 }
 0x179   :  { %2735 = vmatprep.mubr.bf16.mxu0 %v5309_v26  ;;  %3284 = vmatpush1.bf16.msra.mxu0 %v4479_v40  ;;  %v5416_v33 = vpop.f32.mrf.mxu1  ;;  %v4493_v26 = vld [vmem:[#allocation5 + $0x34] ss:$8 sps:$4 sm:$0xff]   ;;  %v4548_v40 = vld [vmem:[#allocation5 + $0x100] ss:$8 sps:$4 sm:$0xff]  }
 0x17a   :  { %2799 = vmatmul.mubr.bf16.vlgmr.msra.gmra.mxu1 %v5226_v63  ;;  %3285 = vmatprep.subr.bf16.mxu0 %v4484_v16  ;;  %v4554_v45 = vld [vmem:[#allocation5 + $0x1e0] ss:$8 sps:$4 sm:$0xff]  }
 0x17b   :  { %2808 = vmatprep.mubr.bf16.mxu1 %v5328_v7  ;;  %v5422_v63 = vpop.f32.mrf.mxu1  ;;  %v5426_v7 = vpop.f32.mrf.mxu0  ;;  %3357 = vmatpush1.bf16.msra.mxu1 %v4527_v10  ;;  %v5481_v10 = vld [vmem:[%s5716_s4] sm:$0xf] }
 0x17d   :  { %3286 = vmatpush1.bf16.msra.mxu0 %v4482_v56  ;;  %v5428_v9 = vpop.f32.mrf.mxu1  ;;  %v5430_v50 = vpop.f32.mrf.mxu0  ;;  %v4553_v56 = vld [vmem:[#allocation5 + $0x1f4] ss:$8 sps:$4 sm:$0xff]  }
 0x17e   :  { %3287 = vmatprep.subr.bf16.mxu0 %v4487_v48  ;;  %v4518_v48 = vld [vmem:[#allocation5 + $0xa0] ss:$8 sps:$4 sm:$0xff]  }
 0x180   :  { %2736 = vmatmul.mubr.bf16.gmra.mxu0 %v5266_v12  ;;  %v4496_v12 = vld [vmem:[#allocation5 + $0x24] ss:$8 sps:$4 sm:$0xff]  }
 0x181   :  { %2745 = vmatprep.mubr.bf16.mxu0 %v5358_v1  ;;  %3288 = vmatpush1.bf16.msra.mxu0 %v4485_v34  ;;  %v5434_v1 = vpop.f32.mrf.mxu1 }
 0x182   :  { %2809 = vmatmul.mubr.bf16.gmra.mxu1 %v5286_v22  ;;  %3289 = vmatprep.subr.bf16.mxu0 %v4490_v58  ;;  %v4494_v22 = vld [vmem:[#allocation5 + $0x20] ss:$8 sps:$4 sm:$0xff]   ;;  %v4523_v58 = vld [vmem:[#allocation5 + $0x94] ss:$8 sps:$4 sm:$0xff]  }
 0x183   :  { %2818 = vmatprep.mubr.bf16.mxu1 %v5365_v59  ;;  %v5437_v59 = vpop.f32.mrf.mxu0 }
 0x185   :  { %3290 = vmatpush1.bf16.msra.mxu0 %v4488_v57  ;;  %v4551_v57 = vld [vmem:[#allocation5 + $0x1f0] ss:$8 sps:$4 sm:$0xff]  }
 0x186   :  { %3291 = vmatprep.subr.bf16.mxu0 %v4493_v26  ;;  %v5440_v47 = vpop.f32.mrf.mxu1 }
 0x188   :  { %2746 = vmatmul.mubr.bf16.gmra.mxu0 %v5335_v29  ;;  %v4497_v29 = vld [vmem:[#allocation5 + $0x10] ss:$8 sps:$4 sm:$0xff]   ;;  %v5444_v3 = vpop.f32.mrf.mxu1 }
 0x189   :  { %2755 = vmatprep.mubr.bf16.mxu0 %v5378_v30  ;;  %3292 = vmatpush1.bf16.msra.mxu0 %v4491_v49  ;;  %v5442_v30 = vpop.f32.mrf.mxu0  ;;  %v4556_v49 = vld [vmem:[#allocation5 + $0x1e4] ss:$8 sps:$4 sm:$0xff]  }
 0x18a   :  { %2819 = vmatmul.mubr.bf16.gmra.mxu1 %v5342_v51  ;;  %3293 = vmatprep.subr.bf16.mxu0 %v4496_v12  ;;  %v4532_v51 = vld [vmem:[#allocation5 + $0x164] ss:$8 sps:$4 sm:$0xff]   ;;  %v5450_v28 = vpop.f32.mrf.mxu1  ;;  %v4521_v12 = vld [vmem:[#allocation5 + $0x90] ss:$8 sps:$4 sm:$0xff]  }
 0x18b   :  { %2828 = vmatprep.mubr.bf16.mxu1 %v5384_v24  ;;  %v4500_v24 = vld [vmem:[#allocation5] ss:$8 sps:$4 sm:$0xff]   ;;  %3358 = vmatprep.subr.bf16.mxu1 %v4532_v51  ;;  %v5447_v60 = vpop.f32.mrf.mxu0 }
 0x18c   :  { %3359 = vmatpush1.bf16.msra.mxu1 %v4530_v21  ;;  %v5454_v27 = vpop.f32.mrf.mxu1  ;;  %v5794_v21 = vld [vmem:[#allocation17_spill] sm:$0xff] }
 0x18d   :  { %3294 = vmatpush1.bf16.msra.mxu0 %v4494_v22  ;;  %3360 = vmatprep.subr.bf16.mxu1 %v4535_v38  ;;  %v5452_v19 = vpop.f32.mrf.mxu0  ;;  %v5487_v51 = vrot.slane %v5481_v10, %v5794_v21 }
 0x18e   :  { %3295 = vmatprep.subr.bf16.mxu0 %v4499_v20  ;;  %v4526_v20 = vld [vmem:[#allocation5 + $0x84] ss:$8 sps:$4 sm:$0xff]  }
 0x190   :  { %2756 = vmatmul.mubr.bf16.gmra.mxu0 %v5388_v41  ;;  %v4508_v41 = vld [vmem:[#allocation5 + $0xe4] ss:$8 sps:$4 sm:$0xff]   ;;  %3361 = vmatpush1.bf16.msra.mxu1 %v4533_v23 }
 0x191   :  { %3296 = vmatpush1.bf16.msra.mxu0 %v4497_v29  ;;  %3362 = vmatprep.subr.bf16.mxu1 %v4538_v8  ;;  %v5456_v61 = vpop.f32.mrf.mxu0  ;;  %v5458_v31 = vpop.f32.mrf.mxu1  ;;  %v2292_v8 = vadd.f32 %v5418_v13, %v5487_v51  ;;  %v2296_v13 = vadd.f32 %v5430_v50, %v5487_v51 }
 0x192   :  { %2829 = vmatmul.mubr.bf16.gmra.mxu1 %v5381_v62  ;;  %3297 = vmatprep.subr.bf16.mxu0 %v4502_v54  ;;  %v4506_v62 = vld [vmem:[#allocation5 + $0xe0] ss:$8 sps:$4 sm:$0xff]   ;;  %v4559_v54 = vld [vmem:[#allocation5 + $0x1d4] ss:$8 sps:$4 sm:$0xff]  }
 0x193   :  { %v5460_v52 = vpop.f32.mrf.mxu0  ;;  %v5462_v11 = vpop.f32.mrf.mxu1 }
 0x194   :  { %3363 = vmatpush1.bf16.msra.mxu1 %v4536_v53  ;;  %v4562_v53 = vld [vmem:[#allocation5 + $0x1c4] ss:$8 sps:$4 sm:$0xff]  }
 0x195   :  { %3298 = vmatpush1.bf16.msra.mxu0 %v4500_v24  ;;  %3364 = vmatprep.subr.bf16.mxu1 %v4541_v25  ;;  %v5464_v17 = vpop.f32.mrf.mxu0  ;;  %v5466_v18 = vpop.f32.mrf.mxu1  ;;  %v4524_v24 = vld [vmem:[#allocation5 + $0x80] ss:$8 sps:$4 sm:$0xff]  }
 0x196   :  { %3299 = vmatprep.subr.bf16.mxu0 %v4505_v15  ;;  %v5795_v15 = vld [vmem:[#allocation16_spill] sm:$0xff] }
 0x197   :  { %v5468_v39 = vpop.f32.mrf.mxu0  ;;  %v5470_v16 = vpop.f32.mrf.mxu1  ;;  %v5491_v23 = vrot.slane %v5481_v10, %v5795_v15 }
 0x198   :  { %3365 = vmatpush1.bf16.msra.mxu1 %v4539_v14  ;;  %v4560_v14 = vld [vmem:[#allocation5 + $0x1c0] ss:$8 sps:$4 sm:$0xff]  }
 0x199   :  { %3300 = vmatpush2.bf16.msra.mxu0 %v4503_v36  ;;  %3366 = vmatprep.subr.bf16.mxu1 %v4544_v0  ;;  %v4557_v36 = vld [vmem:[#allocation5 + $0x1d0] ss:$8 sps:$4 sm:$0xff]  }
 0x19a   :  { %3301 = vmatprep.subr.bf16.mxu0 %v4508_v41  ;;  %v5472_v34 = vpop.f32.mrf.mxu0 }
 0x19c   :  { %3367 = vmatpush1.bf16.msra.mxu1 %v4542_v2  ;;  %v5476_v22 = vpop.f32.mrf.mxu0 }
 0x19d   :  { %3302 = vmatpush2.bf16.msra.mxu0 %v4506_v62  ;;  %3368 = vmatprep.subr.bf16.mxu1 %v4547_v46  ;;  %v5474_v26 = vpop.f32.mrf.mxu1  ;;  %v2290_v62 = vadd.f32 %v5414_v32, %v5491_v23 }
 0x19e   :  { %3303 = vmatprep.subr.bf16.mxu0 %v4511_v37  ;;  %v5493_v38 = vpop.f32.mrf.mxu0  ;;  %v2294_v37 = vadd.f32 %v5426_v7, %v5491_v23 }
 0x19f   :  { %v5483_v29 = vpop.f32.mrf.mxu1  ;;  %v2363_v2 = vadd.f32 %v5416_v33, %v2290_v62  ;;  %v2300_v33 = vadd.f32 %v5437_v59, %v5491_v23 }
 0x1a0   :  { %3369 = vmatpush1.bf16.msra.mxu1 %v4545_v6  ;;  %v5501_v25 = vpop.f32.mrf.mxu0 }
 0x1a1   :  { %3304 = vmatpush2.bf16.msra.mxu0 %v4509_v42  ;;  %3370 = vmatprep.subr.bf16.mxu1 %v4550_v44  ;;  %v5495_v41 = vpop.f32.mrf.mxu1  ;;  %v2373_v59 = vadd.f32 %v5440_v47, %v2300_v33 }
 0x1a2   :  { %3305 = vmatprep.subr.bf16.mxu0 %v4514_v5  ;;  %v2365_v5 = vadd.f32 %v5422_v63, %v2292_v8 }
 0x1a3   :  { %v5505_v0 = vpop.f32.mrf.mxu1 }
 0x1a4   :  { %3371 = vmatpush1.bf16.msra.mxu1 %v4548_v40  ;;  %v4563_v40 = vld [vmem:[#allocation5 + $0x1b0] ss:$8 sps:$4 sm:$0xff]  }
 0x1a5   :  { %3306 = vmatpush2.bf16.msra.mxu0 %v4512_v55  ;;  %3372 = vmatprep.subr.bf16.mxu1 %v4553_v56  ;;  %v2367_v55 = vadd.f32 %v5428_v9, %v2294_v37  ;;  %v4565_v56 = vld [vmem:[#allocation5 + $0x1b4] ss:$8 sps:$4 sm:$0xff]   ;;  %v2304_v9 = vadd.f32 %v5447_v60, %v5491_v23 }
 0x1a6   :  { %3307 = vmatprep.subr.bf16.mxu0 %v4517_v35 }
 0x1a7   :  { %v2377_v60 = vadd.f32 %v5450_v28, %v2304_v9  ;;  %v2310_v28 = vadd.f32 %v5456_v61, %v5491_v23  ;;  %v2316_v61 = vadd.f32 %v5468_v39, %v5487_v51 }
 0x1a8   :  { %3373 = vmatpush2.bf16.msra.mxu1 %v4551_v57 }
 0x1a9   :  { %3308 = vmatpush2.bf16.msra.mxu0 %v4515_v4  ;;  %3374 = vmatprep.subr.bf16.mxu1 %v4556_v49  ;;  %v2369_v4 = vadd.f32 %v5434_v1, %v2296_v13  ;;  %v2389_v39 = vadd.f32 %v5470_v16, %v2316_v61 }
 0x1aa   :  { %3309 = vmatprep.subr.bf16.mxu0 %v4520_v43  ;;  %v2302_v43 = vadd.f32 %v5442_v30, %v5487_v51 }
 0x1ac   :  { %3375 = vmatpush2.bf16.msra.mxu1 %v4554_v45  ;;  %v2375_v30 = vadd.f32 %v5444_v3, %v2302_v43  ;;  %v2306_v45 = vadd.f32 %v5452_v19, %v5487_v51  ;;  %v2312_v19 = vadd.f32 %v5460_v52, %v5487_v51 }
 0x1ad   :  { %3310 = vmatpush2.bf16.msra.mxu0 %v4518_v48  ;;  %3376 = vmatprep.subr.bf16.mxu1 %v4559_v54 }
 0x1ae   :  { %3311 = vmatprep.subr.bf16.mxu0 %v4523_v58  ;;  %v2385_v33 = vadd.f32 %v5462_v11, %v2312_v19 }
 0x1b0   :  { %3377 = vmatpush2.bf16.msra.mxu1 %v4557_v36 }
 0x1b1   :  { %3312 = vmatpush2.bf16.msra.mxu0 %v4521_v12  ;;  %3378 = vmatprep.subr.bf16.mxu1 %v4562_v53 }
 0x1b2   :  { %3313 = vmatprep.subr.bf16.mxu0 %v4526_v20 }
 0x1b4   :  { %3379 = vmatpush2.bf16.msra.mxu1 %v4560_v14  ;;  %v4566_v14 = vld [vmem:[#allocation5 + $0x1a0] ss:$8 sps:$4 sm:$0xff]  }
 0x1b5   :  { %3314 = vmatpush2.bf16.msra.mxu0 %v4524_v24  ;;  %3380 = vmatprep.subr.bf16.mxu1 %v4565_v56 }
 0x1b7   :  { %v2435_v42 = vpop.f32.mrf.mxu0 }
 0x1b8   :  { %v2436_v7 = vadd.f32 %v2435_v42, %v2363_v2  ;;  %3381 = vmatpush2.bf16.msra.mxu1 %v4563_v40  ;;  %v4568_v42 = vld [vmem:[#allocation5 + $0x1a4] ss:$8 sps:$4 sm:$0xff]  }
 0x1b9   :  { %v2437_v32 = vpop.f32.mrf.mxu0  ;;  %3382 = vmatprep.subr.bf16.mxu1 %v4568_v42 }
 0x1ba   :  { %v2508_v46 = vpop.f32.mrf.mxu1  ;;  %v2438_v35 = vadd.f32 %v2437_v32, %v2365_v5 }
 0x1bb   :  { %v2439_v44 = vpop.f32.mrf.mxu0  ;;  %v2509_v12 = vadd.f32 %v2508_v46, %v2436_v7  ;;  %v2379_v46 = vadd.f32 %v5454_v27, %v2306_v45 }
 0x1bc   :  { %v2510_v6 = vpop.f32.mrf.mxu1  ;;  %v2440_v63 = vadd.f32 %v2439_v44, %v2367_v55  ;;  %v4571_v55 = vld [vmem:[#allocation5 + $0x194] ss:$8 sps:$4 sm:$0xff]   ;;  %3383 = vmatpush2.bf16.msra.mxu1 %v4566_v14 }
 0x1bd   :  { %v2441_v48 = vpop.f32.mrf.mxu0  ;;  %v2511_v58 = vadd.f32 %v2510_v6, %v2438_v35  ;;  %v2839_v5 = vmax.f32 %v2509_v12, 0.0  ;;  %v2314_v35 = vadd.f32 %v5464_v17, %v5491_v23  ;;  %3384 = vmatprep.subr.bf16.mxu1 %v4571_v55 }
 0x1be   :  { %v2512_v50 = vpop.f32.mrf.mxu1  ;;  %v2442_v49 = vadd.f32 %v2441_v48, %v2369_v4  ;;  %v4569_v4 = vld [vmem:[#allocation5 + $0x190] ss:$8 sps:$4 sm:$0xff]  }
 0x1bf   :  { %v2513_v57 = vadd.f32 %v2512_v50, %v2440_v63  ;;  %v2445_v20 = vpop.f32.mrf.mxu0  ;;  %v2840_v8 = vmax.f32 %v2511_v58, 0.0  ;;  %v2383_v50 = vadd.f32 %v5458_v31, %v2310_v28  ;;  %v2322_v31 = vadd.f32 %v5476_v22, %v5487_v51 }
 0x1c0   :  { %v2514_v1 = vpop.f32.mrf.mxu1  ;;  %v2446_v13 = vadd.f32 %v2445_v20, %v2373_v59  ;;  %3385 = vmatpush2.bf16.msra.mxu1 %v4569_v4  ;;  %v4572_v20 = vld [vmem:[#allocation5 + $0x180] ss:$8 sps:$4 sm:$0xff]  }
 0x1c1   :  { %v2515_v54 = vadd.f32 %v2514_v1, %v2442_v49  ;;  %v2843_v24 = vmax.f32 %v2513_v57, 0.0  ;;  %v2447_v53 = vpop.f32.mrf.mxu0  ;;  %v2387_v57 = vadd.f32 %v5466_v18, %v2314_v35  ;;  %v2320_v18 = vadd.f32 %v5472_v34, %v5491_v23 }
 0x1c2   :  { %v2518_v36 = vpop.f32.mrf.mxu1  ;;  %v2448_v37 = vadd.f32 %v2447_v53, %v2375_v30  ;;  %v4574_v30 = vld [vmem:[#allocation5 + $0x184] ss:$8 sps:$4 sm:$0xff]   ;;  %v2326_v34 = vadd.f32 %v5501_v25, %v5487_v51 }
 0x1c3   :  { %v2844_v62 = vmax.f32 %v2515_v54, 0.0  ;;  %v2449_v3 = vpop.f32.mrf.mxu0  ;;  %v2871_v7 = vpack.c.bf16 %v2843_v24, %v2839_v5  ;;  %v2519_v52 = vadd.f32 %v2518_v36, %v2446_v13  ;;  %3386 = vmatprep.subr.bf16.mxu1 %v4574_v30  ;;  %v2395_v13 = vadd.f32 %v5483_v29, %v2322_v31 }
 0x1c4   :  { %v2520_v2 = vpop.f32.mrf.mxu1  ;;  %v2450_v32 = vadd.f32 %v2449_v3, %v2377_v60  ;;  %3387 = vmatpush2.bf16.msra.mxu1 %v4572_v20  ;;  %v2393_v3 = vadd.f32 %v5474_v26, %v2320_v18  ;;  %v2399_v29 = vadd.f32 %v5505_v0, %v2326_v34  ;;  %v5589_v34 = vld [vmem:[#allocation7 + $0x68] sm:$0xff]  }
 0x1c5   :  { %v2872_v47 = vpack.c.bf16 %v2844_v62, %v2840_v8  ;;  %v2451_v44 = vpop.f32.mrf.mxu0  ;;  %v2521_v43 = vadd.f32 %v2520_v2, %v2448_v37  ;;  %v2847_v45 = vmax.f32 %v2519_v52, 0.0  ;;  %v2324_v62 = vadd.f32 %v5493_v38, %v5491_v23 }
 0x1c6   :  { %v2522_v6 = vpop.f32.mrf.mxu1  ;;  %v2452_v63 = vadd.f32 %v2451_v44, %v2379_v46 }
 0x1c7   :  { %v2523_v27 = vadd.f32 %v2522_v6, %v2450_v32  ;;  %3315 = vmatprep.mubr.bf16.mxu0 %v2872_v47  ;;  %v2455_v56 = vpop.f32.mrf.mxu0  ;;  %v2848_v49 = vmax.f32 %v2521_v43, 0.0  ;;  %v2397_v23 = vadd.f32 %v5495_v41, %v2324_v62 }
 0x1c8   :  { %v2524_v40 = vpop.f32.mrf.mxu1  ;;  %3316 = vmatmul.mubr.bf16.vlgmr.msra.gmra.mxu0 %v2871_v7  ;;  %v2456_v54 = vadd.f32 %v2455_v56, %v2383_v50 }
 0x1c9   :  { %v2525_v17 = vadd.f32 %v2524_v40, %v2452_v63  ;;  %v2851_v48 = vmax.f32 %v2523_v27, 0.0  ;;  %v2457_v58 = vpop.f32.mrf.mxu0 }
 0x1ca   :  { %v2528_v9 = vpop.f32.mrf.mxu1  ;;  %v2458_v1 = vadd.f32 %v2457_v58, %v2385_v33 }
 0x1cb   :  { %v2852_v12 = vmax.f32 %v2525_v17, 0.0  ;;  %v2459_v59 = vpop.f32.mrf.mxu0  ;;  %v2875_v53 = vpack.c.bf16 %v2851_v48, %v2847_v45  ;;  %v2529_v16 = vadd.f32 %v2528_v9, %v2456_v54 }
 0x1cc   :  { %v2530_v11 = vpop.f32.mrf.mxu1  ;;  %v2460_v36 = vadd.f32 %v2459_v59, %v2387_v57 }
 0x1cd   :  { %v2876_v24 = vpack.c.bf16 %v2852_v12, %v2848_v49  ;;  %v2461_v8 = vpop.f32.mrf.mxu0  ;;  %v2531_v37 = vadd.f32 %v2530_v11, %v2458_v1  ;;  %v2855_v28 = vmax.f32 %v2529_v16, 0.0  ;;  %v5579_v16 = vld [vmem:[#allocation7 + $0x70] sm:$0xff]  }
 0x1ce   :  { %v2532_v60 = vpop.f32.mrf.mxu1  ;;  %v2462_v42 = vadd.f32 %v2461_v8, %v2389_v39 }
 0x1cf   :  { %v2533_v14 = vadd.f32 %v2532_v60, %v2460_v36  ;;  %3325 = vmatprep.mubr.bf16.mxu0 %v2876_v24  ;;  %v2465_v22 = vpop.f32.mrf.mxu0  ;;  %v2856_v38 = vmax.f32 %v2531_v37, 0.0 }
 0x1d0   :  { %v2534_v5 = vpop.f32.mrf.mxu1  ;;  %3326 = vmatmul.mubr.bf16.gmra.mxu0 %v2875_v53  ;;  %v2466_v35 = vadd.f32 %v2465_v22, %v2393_v3 }
 0x1d1   :  { %v2535_v2 = vadd.f32 %v2534_v5, %v2462_v42  ;;  %v2859_v46 = vmax.f32 %v2533_v14, 0.0  ;;  %v2467_v47 = vpop.f32.mrf.mxu0  ;;  %v4575_v14 = vld [vmem:[#allocation7 + $0x78] sm:$0xff]  }
 0x1d2   :  { %v2538_v19 = vpop.f32.mrf.mxu1  ;;  %v2468_v55 = vadd.f32 %v2467_v47, %v2395_v13  ;;  %v5577_v42 = vld [vmem:[#allocation7 + $0x38] sm:$0xff]   ;;  %4016 = vmatprep.subr.bf16.mxu0 %v4575_v14  ;;  %4056 = vmatprep.subr.bf16.mxu1 %v4575_v14  ;;  %v5586_v13 = vld [vmem:[#allocation7 + $0x30] sm:$0xff]  }
 0x1d3   :  { %v2860_v32 = vmax.f32 %v2535_v2, 0.0  ;;  %v2469_v6 = vpop.f32.mrf.mxu0  ;;  %v2879_v51 = vpack.c.bf16 %v2859_v46, %v2855_v28  ;;  %v2539_v52 = vadd.f32 %v2538_v19, %v2466_v35  ;;  %4017 = vmatpush3.bf16.msra.mxu0 %v5577_v42  ;;  %v5596_v46 = vld [vmem:[#allocation7 + $0x28] sm:$0xff]   ;;  %v5599_v19 = vld [vmem:[#allocation7 + $0x60] sm:$0xff]  }
 0x1d4   :  { %v2540_v7 = vpop.f32.mrf.mxu1  ;;  %v2470_v4 = vadd.f32 %v2469_v6, %v2397_v23  ;;  %4018 = vmatprep.subr.bf16.mxu0 %v5579_v16  ;;  %v5796_v23 = vld [vmem:[#allocation15_spill] sm:$0xff]  ;;  %v5614_v35 = vld [vmem:[#allocation7 + $0x20] sm:$0xff]  }
 0x1d5   :  { %v2880_v44 = vpack.c.bf16 %v2860_v32, %v2856_v38  ;;  %v2471_v43 = vpop.f32.mrf.mxu0  ;;  %v2541_v26 = vadd.f32 %v2540_v7, %v2468_v55  ;;  %v2863_v17 = vmax.f32 %v2539_v52, 0.0  ;;  %v5605_v38 = vrot.slane %v5481_v10, %v5796_v23  ;;  %v5797_v32 = vld [vmem:[#allocation14_spill] sm:$0xff]  ;;  %v5617_v7 = vld [vmem:[#allocation7 + $0x58] sm:$0xff]  }
 0x1d6   :  { %v2542_v25 = vpop.f32.mrf.mxu1  ;;  %v2472_v63 = vadd.f32 %v2471_v43, %v2399_v29  ;;  %v5609_v55 = vrot.slane %v5481_v10, %v5797_v32  ;;  %v5626_v10 = vld [vmem:[#allocation7 + $0x18] sm:$0xff]  }
 0x1d7   :  { %v2543_v27 = vadd.f32 %v2542_v25, %v2470_v4  ;;  %3335 = vmatprep.mubr.bf16.mxu0 %v2880_v44  ;;  %v2864_v33 = vmax.f32 %v2541_v26, 0.0  ;;  %4019 = vmatpush3.bf16.msra.mxu0 %v5586_v13 }
 0x1d8   :  { %v2544_v41 = vpop.f32.mrf.mxu1  ;;  %3336 = vmatmul.mubr.bf16.gmra.mxu0 %v2879_v51  ;;  %4020 = vmatprep.subr.bf16.mxu0 %v5589_v34 }
 0x1d9   :  { %v2545_v40 = vadd.f32 %v2544_v41, %v2472_v63  ;;  %v2867_v56 = vmax.f32 %v2543_v27, 0.0 }
 0x1db   :  { %v2868_v61 = vmax.f32 %v2545_v40, 0.0  ;;  %v2883_v48 = vpack.c.bf16 %v2867_v56, %v2863_v17  ;;  %4021 = vmatpush3.bf16.msra.mxu0 %v5596_v46 }
 0x1dc   :  { %4022 = vmatprep.subr.bf16.mxu0 %v5599_v19 }
 0x1dd   :  { %v2884_v50 = vpack.c.bf16 %v2868_v61, %v2864_v33 }
 0x1df   :  { %3345 = vmatprep.mubr.bf16.mxu0 %v2884_v50  ;;  %4023 = vmatpush3.bf16.msra.mxu0 %v5614_v35 }
 0x1e0   :  { %3346 = vmatmul.mubr.bf16.gmra.mxu0 %v2883_v48  ;;  %4024 = vmatprep.subr.bf16.mxu0 %v5617_v7 }
 0x1e3   :  { %4025 = vmatpush3.bf16.msra.mxu0 %v5626_v10 }
 0x1f8   :  { %v2581_v0 = vpop.f32.mrf.mxu0 }
 0x1f9   :  { %v2582_v44 = vadd.f32 %v2581_v0, %v5609_v55 }
 0x1fa   :  { %v2654_v9 = vpop.f32.mrf.mxu1  ;;  %v2583_v58 = vpop.f32.mrf.mxu0 }
 0x1fb   :  { %v2584_v29 = vadd.f32 %v2583_v58, %v5605_v38  ;;  %v2655_v63 = vadd.f32 %v2654_v9, %v2582_v44 }
 0x1fc   :  { %v2656_v57 = vpop.f32.mrf.mxu1  ;;  %v2585_v49 = vpop.f32.mrf.mxu0 }
 0x1fd   :  { %v2586_v51 = vadd.f32 %v2585_v49, %v5609_v55  ;;  %v2657_v26 = vadd.f32 %v2656_v57, %v2584_v29 }
 0x1fe   :  { %v2658_v12 = vpop.f32.mrf.mxu1  ;;  %v2587_v1 = vpop.f32.mrf.mxu0 }
 0x1ff   :  { %v2588_v27 = vadd.f32 %v2587_v1, %v5605_v38  ;;  %v2659_v40 = vadd.f32 %v2658_v12, %v2586_v51 }
 0x200   :  { %v2660_v20 = vpop.f32.mrf.mxu1  ;;  %v5549_v30 = vpop.f32.mrf.mxu0 }
 0x201   :  { %v2661_v50 = vadd.f32 %v2660_v20, %v2588_v27  ;;  %v2592_v58 = vadd.f32 %v5549_v30, %v5609_v55 }
 0x202   :  { %v5551_v45 = vpop.f32.mrf.mxu1  ;;  %v2593_v54 = vpop.f32.mrf.mxu0 }
 0x203   :  { %v2594_v48 = vadd.f32 %v2593_v54, %v5605_v38  ;;  %v2665_v51 = vadd.f32 %v5551_v45, %v2592_v58 }
 0x204   :  { %v5553_v11 = vpop.f32.mrf.mxu1  ;;  %v5555_v59 = vpop.f32.mrf.mxu0 }
 0x205   :  { %v2596_v9 = vadd.f32 %v5555_v59, %v5609_v55  ;;  %v2667_v44 = vadd.f32 %v5553_v11, %v2594_v48 }
 0x206   :  { %v5557_v39 = vpop.f32.mrf.mxu1  ;;  %v5559_v31 = vpop.f32.mrf.mxu0 }
 0x207   :  { %v2598_v20 = vadd.f32 %v5559_v31, %v5605_v38  ;;  %v2669_v27 = vadd.f32 %v5557_v39, %v2596_v9 }
 0x208   :  { %v5561_v24 = vpop.f32.mrf.mxu1  ;;  %v5563_v36 = vpop.f32.mrf.mxu0 }
 0x209   :  { %v2671_v11 = vadd.f32 %v5561_v24, %v2598_v20  ;;  %v2602_v45 = vadd.f32 %v5563_v36, %v5609_v55 }
 0x20a   :  { %v5565_v18 = vpop.f32.mrf.mxu1  ;;  %v5567_v53 = vpop.f32.mrf.mxu0 }
 0x20b   :  { %v2604_v31 = vadd.f32 %v5567_v53, %v5605_v38 }
 0x20c   :  { %v5569_v60 = vpop.f32.mrf.mxu1  ;;  %v5571_v8 = vpop.f32.mrf.mxu0 }
 0x20d   :  { %v2677_v53 = vadd.f32 %v5569_v60, %v2604_v31 }
 0x20e   :  { %v5573_v62 = vpop.f32.mrf.mxu1  ;;  %v5575_v37 = vpop.f32.mrf.mxu0 }
 0x210   :  { %v5581_v5 = vpop.f32.mrf.mxu1  ;;  %v5583_v22 = vpop.f32.mrf.mxu0 }
 0x212   :  { %v5591_v2 = vpop.f32.mrf.mxu1  ;;  %v5593_v3 = vpop.f32.mrf.mxu0 }
 0x214   :  { %v5601_v47 = vpop.f32.mrf.mxu1  ;;  %v5611_v28 = vpop.f32.mrf.mxu0 }
 0x216   :  { %v5619_v6 = vpop.f32.mrf.mxu1  ;;  %v5623_v4 = vpop.f32.mrf.mxu0 }
 0x218   :  { %v5630_v25 = vpop.f32.mrf.mxu1 }
 0x238   :  { %v2727_v43 = vpop.f32.mrf.mxu0 }
 0x239   :  { %v2728_v33 = vadd.f32 %v2727_v43, %v2655_v63 }
 0x23a   :  { %v2800_v52 = vpop.f32.mrf.mxu1  ;;  %v2729_v41 = vpop.f32.mrf.mxu0 }
 0x23b   :  { %v2730_v56 = vadd.f32 %v2729_v41, %v2657_v26  ;;  %v2801_v12 = vadd.f32 %v2800_v52, %v2728_v33 }
 0x23c   :  { %v2802_v61 = vpop.f32.mrf.mxu1  ;;  %v2731_v17 = vpop.f32.mrf.mxu0 }
 0x23d   :  { %v2732_v0 = vadd.f32 %v2731_v17, %v2659_v40  ;;  %v2803_v1 = vadd.f32 %v2802_v61, %v2730_v56  ;;  %v2841_v40 = vmax.f32 %v2801_v12, 0.0 }
 0x23e   :  { %v2804_v57 = vpop.f32.mrf.mxu1  ;;  %v2733_v49 = vpop.f32.mrf.mxu0 }
 0x23f   :  { %v2805_v14 = vadd.f32 %v2804_v57, %v2732_v0  ;;  %v2734_v23 = vadd.f32 %v2733_v49, %v2661_v50  ;;  %v2842_v59 = vmax.f32 %v2803_v1, 0.0  ;;  %v2606_v0 = vadd.f32 %v5571_v8, %v5609_v55 }
 0x240   :  { %v2806_v32 = vpop.f32.mrf.mxu1  ;;  %v2737_v29 = vpop.f32.mrf.mxu0 }
 0x241   :  { %v2807_v54 = vadd.f32 %v2806_v32, %v2734_v23  ;;  %v2845_v30 = vmax.f32 %v2805_v14, 0.0  ;;  %v2738_v52 = vadd.f32 %v2737_v29, %v2665_v51  ;;  %v2608_v14 = vadd.f32 %v5575_v37, %v5605_v38 }
 0x242   :  { %v2810_v43 = vpop.f32.mrf.mxu1  ;;  %v2739_v26 = vpop.f32.mrf.mxu0  ;;  %v2675_v23 = vadd.f32 %v5565_v18, %v2602_v45  ;;  %v2679_v29 = vadd.f32 %v5573_v62, %v2606_v0 }
 0x243   :  { %v2846_v63 = vmax.f32 %v2807_v54, 0.0  ;;  %v2740_v41 = vadd.f32 %v2739_v26, %v2667_v44  ;;  %v2873_v50 = vpack.c.bf16 %v2845_v30, %v2841_v40  ;;  %v2811_v9 = vadd.f32 %v2810_v43, %v2738_v52 }
 0x244   :  { %v2812_v56 = vpop.f32.mrf.mxu1  ;;  %v2741_v33 = vpop.f32.mrf.mxu0  ;;  %v2681_v37 = vadd.f32 %v5581_v5, %v2608_v14 }
 0x245   :  { %v2874_v61 = vpack.c.bf16 %v2846_v63, %v2842_v59  ;;  %v2742_v17 = vadd.f32 %v2741_v33, %v2669_v27  ;;  %v2813_v58 = vadd.f32 %v2812_v56, %v2740_v41  ;;  %v2849_v51 = vmax.f32 %v2811_v9, 0.0 }
 0x246   :  { %v2814_v48 = vpop.f32.mrf.mxu1  ;;  %v2743_v39 = vpop.f32.mrf.mxu0  ;;  %v2616_v63 = vadd.f32 %v5611_v28, %v5609_v55 }
 0x247   :  { %v2815_v57 = vadd.f32 %v2814_v48, %v2742_v17  ;;  %v2744_v49 = vadd.f32 %v2743_v39, %v2671_v11  ;;  %3388 = vmatprep.mubr.bf16.mxu1 %v2874_v61  ;;  %v2850_v44 = vmax.f32 %v2813_v58, 0.0 }
 0x248   :  { %v2816_v24 = vpop.f32.mrf.mxu1  ;;  %v2747_v1 = vpop.f32.mrf.mxu0  ;;  %3389 = vmatmul.mubr.bf16.vlgmr.msra.gmra.mxu1 %v2873_v50  ;;  %v2689_v31 = vadd.f32 %v5619_v6, %v2616_v63 }
 0x249   :  { %v2817_v36 = vadd.f32 %v2816_v24, %v2744_v49  ;;  %4064 = vmatpush3.bf16.msra.mxu1 %v5577_v42  ;;  %v2853_v12 = vmax.f32 %v2815_v57, 0.0  ;;  %v2748_v60 = vadd.f32 %v2747_v1, %v2675_v23  ;;  %v2614_v42 = vadd.f32 %v5593_v3, %v5605_v38  ;;  %v4585_v23 = vld [vmem:[#allocation7 + $0x50] sm:$0xff]  }
 0x24a   :  { %v2820_v8 = vpop.f32.mrf.mxu1  ;;  %v2749_v32 = vpop.f32.mrf.mxu0  ;;  %4057 = vmatprep.subr.bf16.mxu1 %v5579_v16  ;;  %v2612_v16 = vadd.f32 %v5583_v22, %v5609_v55  ;;  %v2618_v22 = vadd.f32 %v5623_v4, %v5605_v38  ;;  %4026 = vmatprep.subr.bf16.mxu0 %v4585_v23 }
 0x24b   :  { %v2854_v20 = vmax.f32 %v2817_v36, 0.0  ;;  %v2750_v54 = vadd.f32 %v2749_v32, %v2677_v53  ;;  %v2877_v62 = vpack.c.bf16 %v2853_v12, %v2849_v51  ;;  %v2821_v3 = vadd.f32 %v2820_v8, %v2748_v60  ;;  %v4587_v12 = vld [vmem:[#allocation7 + $0x48] sm:$0xff]   ;;  %v4589_v32 = vld [vmem:[#allocation7 + $0x40] sm:$0xff]  }
 0x24c   :  { %v2822_v30 = vpop.f32.mrf.mxu1  ;;  %v2751_v43 = vpop.f32.mrf.mxu0  ;;  %v2691_v38 = vadd.f32 %v5630_v25, %v2618_v22  ;;  %v4588_v8 = vld [vmem:[#allocation7 + $0x8] sm:$0xff]  }
 0x24d   :  { %v2878_v18 = vpack.c.bf16 %v2854_v20, %v2850_v44  ;;  %v2752_v26 = vadd.f32 %v2751_v43, %v2679_v29  ;;  %4065 = vmatpush3.bf16.msra.mxu1 %v5586_v13  ;;  %v2823_v41 = vadd.f32 %v2822_v30, %v2750_v54  ;;  %v2687_v13 = vadd.f32 %v5601_v47, %v2614_v42 }
 0x24e   :  { %v2824_v27 = vpop.f32.mrf.mxu1  ;;  %v2753_v59 = vpop.f32.mrf.mxu0  ;;  %4058 = vmatprep.subr.bf16.mxu1 %v5589_v34  ;;  %v2685_v34 = vadd.f32 %v5591_v2, %v2612_v16  ;;  %v2857_v50 = vmax.f32 %v2821_v3, 0.0 }
 0x24f   :  { %v2825_v5 = vadd.f32 %v2824_v27, %v2752_v26  ;;  %v2754_v40 = vadd.f32 %v2753_v59, %v2681_v37  ;;  %3398 = vmatprep.mubr.bf16.mxu1 %v2878_v18  ;;  %v2858_v61 = vmax.f32 %v2823_v41, 0.0  ;;  %v2951_v37 = vld [vmem:[%s5718_s6] sm:$0x3] }
 0x250   :  { %v2826_v52 = vpop.f32.mrf.mxu1  ;;  %v2757_v56 = vpop.f32.mrf.mxu0  ;;  %3399 = vmatmul.mubr.bf16.gmra.mxu1 %v2877_v62  ;;  %v5682_v18 = vrot.slane %v2951_v37, %v5794_v21  ;;  %v5685_v26 = vrot.slane %v2951_v37, %v5795_v15 }
 0x251   :  { %v2827_v33 = vadd.f32 %v2826_v52, %v2754_v40  ;;  %4066 = vmatpush3.bf16.msra.mxu1 %v5596_v46  ;;  %v2861_v11 = vmax.f32 %v2825_v5, 0.0  ;;  %v2758_v47 = vadd.f32 %v2757_v56, %v2685_v34 }
 0x252   :  { %v2830_v55 = vpop.f32.mrf.mxu1  ;;  %v2759_v28 = vpop.f32.mrf.mxu0  ;;  %4059 = vmatprep.subr.bf16.mxu1 %v5599_v19 }
 0x253   :  { %v2862_v17 = vmax.f32 %v2827_v33, 0.0  ;;  %v2760_v45 = vadd.f32 %v2759_v28, %v2687_v13  ;;  %v2881_v2 = vpack.c.bf16 %v2861_v11, %v2857_v50  ;;  %v2831_v49 = vadd.f32 %v2830_v55, %v2758_v47 }
 0x254   :  { %v2832_v48 = vpop.f32.mrf.mxu1  ;;  %v2761_v39 = vpop.f32.mrf.mxu0 }
 0x255   :  { %v2882_v4 = vpack.c.bf16 %v2862_v17, %v2858_v61  ;;  %v2762_v46 = vadd.f32 %v2761_v39, %v2689_v31  ;;  %4067 = vmatpush3.bf16.msra.mxu1 %v5614_v35  ;;  %v2833_v19 = vadd.f32 %v2832_v48, %v2760_v45  ;;  %v2865_v14 = vmax.f32 %v2831_v49, 0.0 }
 0x256   :  { %v2834_v0 = vpop.f32.mrf.mxu1  ;;  %v2763_v58 = vpop.f32.mrf.mxu0  ;;  %4060 = vmatprep.subr.bf16.mxu1 %v5617_v7  ;;  %v4586_v7 = vld [vmem:[#allocation7 + $0x10] sm:$0xff]  }
 0x257   :  { %v2835_v6 = vadd.f32 %v2834_v0, %v2762_v46  ;;  %v2764_v57 = vadd.f32 %v2763_v58, %v2691_v38  ;;  %3408 = vmatprep.mubr.bf16.mxu1 %v2882_v4  ;;  %v2866_v1 = vmax.f32 %v2833_v19, 0.0  ;;  %4027 = vmatpush3.bf16.msra.mxu0 %v4586_v7 }
 0x258   :  { %v2836_v9 = vpop.f32.mrf.mxu1  ;;  %3409 = vmatmul.mubr.bf16.gmra.mxu1 %v2881_v2  ;;  %4028 = vmatprep.subr.bf16.mxu0 %v4587_v12 }
 0x259   :  { %v2837_v24 = vadd.f32 %v2836_v9, %v2764_v57  ;;  %4068 = vmatpush3.bf16.msra.mxu1 %v5626_v10  ;;  %v2869_v25 = vmax.f32 %v2835_v6, 0.0  ;;  %v4590_v10 = vld [vmem:[#allocation7] sm:$0xff]  }
 0x25a   :  { %4061 = vmatprep.subr.bf16.mxu1 %v4585_v23 }
 0x25b   :  { %v2870_v53 = vmax.f32 %v2837_v24, 0.0  ;;  %v2885_v36 = vpack.c.bf16 %v2869_v25, %v2865_v14  ;;  %4029 = vmatpush3.bf16.msra.mxu0 %v4588_v8 }
 0x25c   :  { %4030 = vmatprep.subr.bf16.mxu0 %v4589_v32 }
 0x25d   :  { %v2886_v35 = vpack.c.bf16 %v2870_v53, %v2866_v1  ;;  %4069 = vmatpush3.bf16.msra.mxu1 %v4586_v7 }
 0x25e   :  { %4062 = vmatprep.subr.bf16.mxu1 %v4587_v12 }
 0x25f   :  { %3418 = vmatprep.mubr.bf16.mxu1 %v2886_v35  ;;  %4031 = vmatpush3.bf16.msra.mxu0 %v4590_v10 }
 0x260   :  { %3419 = vmatmul.mubr.bf16.gmra.mxu1 %v2885_v36 }
 0x261   :  { %4070 = vmatpush3.bf16.msra.mxu1 %v4588_v8 }
 0x262   :  { %4063 = vmatprep.subr.bf16.mxu1 %v4589_v32 }
 0x265   :  { %4071 = vmatpush3.bf16.msra.mxu1 %v4590_v10 }
 0x288   :  { %v3317_v29 = vpop.f32.mrf.mxu0 }
 0x289   :  { %v3318_v41 = vadd.f32 %v3317_v29, %v5685_v26 }
 0x28a   :  { %v3319_v44 = vpop.f32.mrf.mxu0 }
 0x28b   :  { %v3320_v59 = vadd.f32 %v3319_v44, %v5682_v18 }
 0x28c   :  { %v3321_v20 = vpop.f32.mrf.mxu0 }
 0x28d   :  { %v3322_v63 = vadd.f32 %v3321_v20, %v5685_v26 }
 0x28e   :  { %v3323_v54 = vpop.f32.mrf.mxu0 }
 0x28f   :  { %v3324_v40 = vadd.f32 %v3323_v54, %v5682_v18 }
 0x290   :  { %v3327_v51 = vpop.f32.mrf.mxu0 }
 0x291   :  { %v3328_v50 = vadd.f32 %v3327_v51, %v5685_v26 }
 0x292   :  { %v3329_v60 = vpop.f32.mrf.mxu0 }
 0x293   :  { %v3330_v61 = vadd.f32 %v3329_v60, %v5682_v18 }
 0x294   :  { %v3331_v30 = vpop.f32.mrf.mxu0 }
 0x295   :  { %v3332_v17 = vadd.f32 %v3331_v30, %v5685_v26 }
 0x296   :  { %v3333_v43 = vpop.f32.mrf.mxu0 }
 0x297   :  { %v3334_v39 = vadd.f32 %v3333_v43, %v5682_v18 }
 0x298   :  { %v3337_v42 = vpop.f32.mrf.mxu0 }
 0x299   :  { %v3338_v35 = vadd.f32 %v3337_v42, %v5685_v26 }
 0x29a   :  { %v3339_v62 = vpop.f32.mrf.mxu0 }
 0x29b   :  { %v3340_v1 = vadd.f32 %v3339_v62, %v5682_v18 }
 0x29c   :  { %v3341_v56 = vpop.f32.mrf.mxu0 }
 0x29d   :  { %v3342_v53 = vadd.f32 %v3341_v56, %v5685_v26 }
 0x29e   :  { %v3343_v55 = vpop.f32.mrf.mxu0 }
 0x29f   :  { %v3344_v7 = vadd.f32 %v3343_v55, %v5682_v18 }
 0x2a0   :  { %v3347_v46 = vpop.f32.mrf.mxu0 }
 0x2a2   :  { %v3349_v9 = vpop.f32.mrf.mxu0 }
 0x2a3   :  { %v3350_v42 = vadd.f32 %v3349_v9, %v5682_v18 }
 0x2a4   :  { %v3351_v32 = vpop.f32.mrf.mxu0 }
 0x2a6   :  { %v3353_v30 = vpop.f32.mrf.mxu0 }
 0x308   :  { %v3390_v16 = vpop.f32.mrf.mxu1 }
 0x309   :  { %v3391_v21 = vadd.f32 %v3390_v16, %v3318_v41  ;;  %v3352_v16 = vadd.f32 %v3351_v32, %v5685_v26  ;;  %v3354_v41 = vadd.f32 %v3353_v30, %v5682_v18  ;;  %v3999_v18 = vld [vmem:[%s5720_s8] ss:$0 sm:$0xff]  ;;  %s4688_s8 = smov [#allocation8]  }
 0x30a   :  { %v3392_v27 = vpop.f32.mrf.mxu1  ;;  %s3666_s29 = sshll.u32 %s4688_s8, 4  ;;  %s3667_s29 = int_to_ptr.vmem [resolvable:$true] %s3666_s29 }
 0x30b   :  { %v3393_v3 = vadd.f32 %v3392_v27, %v3320_v59  ;;  %v3429_v28 = vmax.f32 %v3391_v21, 0.0  ;;  %v3348_v27 = vadd.f32 %v3347_v46, %v5685_v26  ;;  %s4651_s30 = scalar_lea.vmem %s3667_s29, 1024  ;;  %p4656_p2 = scmp.lt.s32.totalorder %s3667_s29, %s3667_s29 }
 0x30c   :  { %v3394_v5 = vpop.f32.mrf.mxu1  ;;  %p4652_p1 = scmp.ne.s32.totalorder %s3667_s29, %s4651_s30  ;;  %p4657_p3 = scmp.lt.s32.totalorder %s4651_s30, %s4651_s30 }
 0x30d   :  { %v3395_v52 = vadd.f32 %v3394_v5, %v3322_v63  ;;  %v3430_v34 = vmax.f32 %v3393_v3, 0.0 }
 0x30e   :  { %v3396_v13 = vpop.f32.mrf.mxu1  ;;  %p4658_p4 = por %p4657_p3, %p4656_p2 }
 0x30f   :  { %v3397_v22 = vadd.f32 %v3396_v13, %v3324_v40  ;;  %v3431_v15 = vmax.f32 %v3395_v52, 0.0 }
 0x310   :  { %v3400_v33 = vpop.f32.mrf.mxu1  ;;  %p4659_p5 = pnand %p4658_p4, %p4652_p1 }
 0x311   :  { %v3432_v11 = vmax.f32 %v3397_v22, 0.0  ;;  %v3445_v47 = vpack.c.bf16 %v3431_v15, %v3429_v28  ;;  %v3401_v2 = vadd.f32 %v3400_v33, %v3328_v50 }
 0x312   :  { %v3402_v31 = vpop.f32.mrf.mxu1 }
 0x313   :  { %v3446_v45 = vpack.c.bf16 %v3432_v11, %v3430_v34  ;;  %v3403_v38 = vadd.f32 %v3402_v31, %v3330_v61  ;;  %v3433_v24 = vmax.f32 %v3401_v2, 0.0 }
 0x314   :  { %v3404_v48 = vpop.f32.mrf.mxu1 }
 0x315   :  { %v3405_v4 = vadd.f32 %v3404_v48, %v3332_v17  ;;  %3620 = vmatprep.mubr.bf16.mxu0 %v3446_v45  ;;  %v3434_v57 = vmax.f32 %v3403_v38, 0.0 }
 0x316   :  { %v3406_v0 = vpop.f32.mrf.mxu1  ;;  %3621 = vmatmul.mubr.bf16.vlgmr.msra.gmra.mxu0 %v3445_v47 }
 0x317   :  { %v3407_v58 = vadd.f32 %v3406_v0, %v3334_v39  ;;  %v3435_v19 = vmax.f32 %v3405_v4, 0.0 }
 0x318   :  { %v3410_v6 = vpop.f32.mrf.mxu1 }
 0x319   :  { %v3436_v49 = vmax.f32 %v3407_v58, 0.0  ;;  %v3447_v36 = vpack.c.bf16 %v3435_v19, %v3433_v24  ;;  %v3411_v10 = vadd.f32 %v3410_v6, %v3338_v35 }
 0x31a   :  { %v3412_v25 = vpop.f32.mrf.mxu1 }
 0x31b   :  { %v3448_v14 = vpack.c.bf16 %v3436_v49, %v3434_v57  ;;  %v3413_v12 = vadd.f32 %v3412_v25, %v3340_v1  ;;  %v3437_v43 = vmax.f32 %v3411_v10, 0.0 }
 0x31c   :  { %v3414_v23 = vpop.f32.mrf.mxu1 }
 0x31d   :  { %v3415_v8 = vadd.f32 %v3414_v23, %v3342_v53  ;;  %3628 = vmatprep.mubr.bf16.mxu0 %v3448_v14  ;;  %v3438_v51 = vmax.f32 %v3413_v12, 0.0 }
 0x31e   :  { %v3416_v29 = vpop.f32.mrf.mxu1  ;;  %3629 = vmatmul.mubr.bf16.gmra.mxu0 %v3447_v36 }
 0x31f   :  { %v3417_v44 = vadd.f32 %v3416_v29, %v3344_v7  ;;  %v3439_v20 = vmax.f32 %v3415_v8, 0.0 }
 0x320   :  { %v3420_v54 = vpop.f32.mrf.mxu1 }
 0x321   :  { %v3440_v60 = vmax.f32 %v3417_v44, 0.0  ;;  %v3449_v59 = vpack.c.bf16 %v3439_v20, %v3437_v43  ;;  %v3421_v3 = vadd.f32 %v3420_v54, %v3348_v27 }
 0x322   :  { %v3422_v37 = vpop.f32.mrf.mxu1 }
 0x323   :  { %v3450_v62 = vpack.c.bf16 %v3440_v60, %v3438_v51  ;;  %v3423_v5 = vadd.f32 %v3422_v37, %v3350_v42  ;;  %v3441_v15 = vmax.f32 %v3421_v3, 0.0 }
 0x324   :  { %v3424_v63 = vpop.f32.mrf.mxu1 }
 0x325   :  { %v3425_v40 = vadd.f32 %v3424_v63, %v3352_v16  ;;  %3636 = vmatprep.mubr.bf16.mxu1 %v3450_v62  ;;  %v3442_v13 = vmax.f32 %v3423_v5, 0.0 }
 0x326   :  { %v3426_v52 = vpop.f32.mrf.mxu1  ;;  %3637 = vmatmul.mubr.bf16.vlgmr.msra.gmra.mxu1 %v3449_v59 }
 0x327   :  { %v3427_v56 = vadd.f32 %v3426_v52, %v3354_v41  ;;  %v3443_v21 = vmax.f32 %v3425_v40, 0.0 }
 0x329   :  { %v3444_v22 = vmax.f32 %v3427_v56, 0.0  ;;  %v3451_v34 = vpack.c.bf16 %v3443_v21, %v3441_v15 }
 0x32b   :  { %v3452_v33 = vpack.c.bf16 %v3444_v22, %v3442_v13 }
 0x32d   :  { %3644 = vmatprep.mubr.bf16.mxu1 %v3452_v33 }
 0x32e   :  { %3645 = vmatmul.mubr.bf16.gmra.mxu1 %v3451_v34 }
 0x3d6   :  { %v4032_v26 = vpop.f32.mrf.mxu0 }
 0x3d8   :  { %v4033_v11 = vpop.f32.mrf.mxu0 }
 0x3d9   :  { %v4034_v55 = vadd.f32 %v4033_v11, %v4032_v26 }
 0x3da   :  { %v4035_v28 = vpop.f32.mrf.mxu0 }
 0x3db   :  { %v3623_v31 = vadd.f32 %v4034_v55, %v3999_v18 }
 0x3dc   :  { %v4036_v61 = vpop.f32.mrf.mxu0 }
 0x3dd   :  { %3653 = vst [vmem:[#allocation8] sm:$0xff] %v3623_v31  ;;  %v4037_v17 = vadd.f32 %v4036_v61, %v4035_v28 }
 0x3de   :  { %v4038_v45 = vpop.f32.mrf.mxu0 }
 0x3df   :  { %v3626_v50 = vadd.f32 %v4037_v17, %v3999_v18 }
 0x3e0   :  { %v4039_v47 = vpop.f32.mrf.mxu0 }
 0x3e1   :  { %3654 = vst [vmem:[#allocation8 + $0x8] sm:$0xff] %v3626_v50  ;;  %v4040_v48 = vadd.f32 %v4039_v47, %v4038_v45 }
 0x3e2   :  { %v4041_v39 = vpop.f32.mrf.mxu0 }
 0x3e3   :  { %v3631_v38 = vadd.f32 %v4040_v48, %v3999_v18 }
 0x3e4   :  { %v4042_v4 = vpop.f32.mrf.mxu0 }
 0x3e5   :  { %3655 = vst [vmem:[#allocation8 + $0x10] sm:$0xff] %v3631_v38  ;;  %v4043_v46 = vadd.f32 %v4042_v4, %v4041_v39 }
 0x3e6   :  { %v4044_v2 = vpop.f32.mrf.mxu1 }
 0x3e7   :  { %v3634_v0 = vadd.f32 %v4043_v46, %v3999_v18 }
 0x3e8   :  { %v4045_v58 = vpop.f32.mrf.mxu1 }
 0x3e9   :  { %3656 = vst [vmem:[#allocation8 + $0x18] sm:$0xff] %v3634_v0  ;;  %v4046_v19 = vadd.f32 %v4045_v58, %v4044_v2 }
 0x3ea   :  { %v4047_v6 = vpop.f32.mrf.mxu1 }
 0x3eb   :  { %v3639_v57 = vadd.f32 %v4046_v19, %v3999_v18 }
 0x3ec   :  { %v4048_v49 = vpop.f32.mrf.mxu1 }
 0x3ed   :  { %3657 = vst [vmem:[#allocation8 + $0x20] sm:$0xff] %v3639_v57  ;;  %v4049_v9 = vadd.f32 %v4048_v49, %v4047_v6 }
 0x3ee   :  { %v4050_v24 = vpop.f32.mrf.mxu1 }
 0x3ef   :  { %v3642_v25 = vadd.f32 %v4049_v9, %v3999_v18 }
 0x3f0   :  { %v4051_v1 = vpop.f32.mrf.mxu1 }
 0x3f1   :  { %3658 = vst [vmem:[#allocation8 + $0x28] sm:$0xff] %v3642_v25  ;;  %v4052_v53 = vadd.f32 %v4051_v1, %v4050_v24 }
 0x3f2   :  { %v4053_v14 = vpop.f32.mrf.mxu1 }
 0x3f3   :  { %v3647_v35 = vadd.f32 %v4052_v53, %v3999_v18 }
 0x3f4   :  { %v4054_v36 = vpop.f32.mrf.mxu1 }
 0x3f5   :  { %3659 = vst [vmem:[#allocation8 + $0x30] sm:$0xff] %v3647_v35  ;;  %v4055_v23 = vadd.f32 %v4054_v36, %v4053_v14 }
 0x3f7   :  { %v3650_v7 = vadd.f32 %v4055_v23, %v3999_v18 }
 0x3f9   :  { %3660 = vst [vmem:[#allocation8 + $0x38] sm:$0xff] %v3650_v7 }
 0x3fa   :  { %4662 = shalt.err (!%p4659_p5)
}
 0x3fb   :  { %3672 = dma.vmem_to_hbm [thread:$0]  %s3667_s29, 1024, %s5721_s9, [#allocation4], %s4678_s12, %s4678_s12, %s4679_s13  }
 0x3fc   :  { %4675 = dma.done.wait [#allocation4], 1024  }
 0x3fd   :  { %4676 = vsyncadd [#allocation4], 4294966272 }
 0x3fe   :  { %3676 = vsyncpa [#allocation3], 1 }
 0x3ff   :  { %3677 = vsyncpa [#allocation6], 1 }
 0x400   :  { %3678 = vsyncpa [#allocation4], 1 }

</bundles_post_ra>
